<compile_context>
chip_gen: v5e
topology: v5e:2x2
jax: 0.10.0
libtpu: 0.0.40
codegen_flags: <defaults>
</compile_context>

<pallas_src>
import functools

import jax
import jax.numpy as jnp
from jax.experimental import pallas as pl
from jax.experimental.pallas import tpu as pltpu


def _seq2seq_gru_kernel(x_ref, gi_tab_ref, w_hh_ref, b_hhn_ref, out_ref, gi_buf,
                        *, seq_len, batch, hidden, gate_pack):
    """Fused embedding gather + input projection gather + GRU recurrence.

    x_ref      : SMEM (T, B) int32        token ids
    gi_tab_ref : VMEM (V, 1, GP) f32      per-token input projection, biases folded;
                                          packed gates: lanes [0,H)=r [H,2H)=z [2H,3H)=n
    w_hh_ref   : VMEM (H, GP) f32         hidden->gates weight, transposed, gate-packed
    b_hhn_ref  : VMEM (1, H) f32          hidden bias of the n gate (stays inside r*(...))
    out_ref    : VMEM (T, B, H) f32       GRU output == h_t for every timestep
    gi_buf     : VMEM scratch (T, B, GP)  gathered input projections
    """
    H, B = hidden, batch

    # ---- Phase 1: gather gi rows for all timesteps (off the serial h-chain). ----
    # gi_table already holds emb[tok] @ W_ih^T + folded biases, so the entire
    # "input side" of the GRU is this gather; no matmul needed here.
    for t in range(seq_len):
        for b in range(B):
            tok = x_ref[t, b]
            gi_buf[t, pl.ds(b, 1), :] = gi_tab_ref[tok]          # (1, GP) row copy

    # ---- Phase 2: serial recurrence (the only true data dependence). ----
    w_hh = w_hh_ref[...]                                         # (H, GP), resident
    b_hh_n = jnp.broadcast_to(b_hhn_ref[...], (B, H))            # hoisted broadcast

    def step(t, h_prev):                                         # h_prev: (B, H)
        gi = gi_buf[t]                                           # (B, GP), packed
        gh = jnp.dot(h_prev, w_hh,
                     preferred_element_type=jnp.float32)         # (B, GP), packed
        pre = gi + gh
        # sigmoid(x) = 0.5*(1 + tanh(x/2)): one EUP pass yields both r and z.
        rz = 0.5 * (jnp.tanh(0.5 * pre) + 1.0)
        r = rz[:, 0:H]
        z = rz[:, H:2 * H]
        n = jnp.tanh(gi[:, 2 * H:3 * H] + r * (gh[:, 2 * H:3 * H] + b_hh_n))
        h_new = (1.0 - z) * n + z * h_prev                       # (B, H)
        out_ref[t] = h_new                                       # direct (B, H) store
        return h_new

    h0 = jnp.zeros((B, H), jnp.float32)
    jax.lax.fori_loop(0, seq_len, step, h0, unroll=True)


def prepare_seq2seq_params(emb_table, w_ih, w_hh, b_ih, b_hh):
    """Call-invariant preprocessing (module-init time). PyTorch nn.GRU layout:
    w_ih (3H, E), w_hh (3H, H), b_ih (3H,), b_hh (3H,), gate order [r, z, n]."""
    V, _E = emb_table.shape
    H = w_hh.shape[1]
    GP = max(128, pl.cdiv(3 * H, 128) * 128)       # packed, lane-aligned gate width

    # Fold Embedding and input projection into one table (exact reassociation):
    #   gi_table[v] = emb[v] @ W_ih^T + b_ih + [b_hh_r, b_hh_z, 0]
    # (b_hh of r/z folded here; b_hh_n stays in-kernel inside the r*(...) term).
    b_fold = b_ih + jnp.concatenate([b_hh[:2 * H], jnp.zeros((H,), b_hh.dtype)])
    gi_tab = jnp.dot(emb_table.astype(jnp.float32),
                     jnp.transpose(w_ih).astype(jnp.float32),
                     preferred_element_type=jnp.float32) + b_fold          # (V, 3H)
    gi_tab = jnp.pad(gi_tab, ((0, 0), (0, GP - 3 * H)))
    gi_tab = gi_tab.reshape(V, 1, GP).astype(jnp.float32)                  # (V, 1, GP)

    w_hh_p = jnp.pad(jnp.transpose(w_hh),
                     ((0, 0), (0, GP - 3 * H))).astype(jnp.float32)        # (H, GP)
    b_hhn = b_hh[2 * H:3 * H].reshape(1, H).astype(jnp.float32)            # (1, H)

    return dict(gi_table=gi_tab, w_hh_packed=w_hh_p, b_hh_n=b_hhn,
                hidden=int(H), gate_pack=int(GP))


def seq2seq_forward(x_tokens, params):
    """Equivalent of Seq2Seq.forward(x): self.encoder(self.embedding(x))[0]."""
    T, B = x_tokens.shape
    H, GP = params["hidden"], params["gate_pack"]

    kernel = functools.partial(_seq2seq_gru_kernel, seq_len=T, batch=B,
                               hidden=H, gate_pack=GP)

    return pl.pallas_call(
        kernel,
        out_shape=jax.ShapeDtypeStruct((T, B, H), jnp.float32),
        in_specs=[
            pl.BlockSpec(memory_space=pltpu.MemorySpace.SMEM),   # token ids (scalars)
            pl.BlockSpec(memory_space=pltpu.MemorySpace.VMEM),   # gi table (resident)
            pl.BlockSpec(memory_space=pltpu.MemorySpace.VMEM),   # w_hh packed
            pl.BlockSpec(memory_space=pltpu.MemorySpace.VMEM),   # b_hh_n
        ],
        out_specs=pl.BlockSpec(memory_space=pltpu.MemorySpace.VMEM),
        scratch_shapes=[pltpu.VMEM((T, B, GP), jnp.float32)],    # gathered gi slab
    )(x_tokens.astype(jnp.int32), params["gi_table"],
      params["w_hh_packed"], params["b_hh_n"])


def _gru_reference(emb_x, w_ih, w_hh, b_ih, b_hh):
    """Pure-JAX reference of PyTorch nn.GRU (single layer), for validation."""
    H = w_hh.shape[1]

    def step(h, x_t):
        gi = x_t @ w_ih.T + b_ih
        gh = h @ w_hh.T + b_hh
        i_r, i_z, i_n = gi[:, :H], gi[:, H:2 * H], gi[:, 2 * H:]
        h_r, h_z, h_n = gh[:, :H], gh[:, H:2 * H], gh[:, 2 * H:]
        r = jax.nn.sigmoid(i_r + h_r)
        z = jax.nn.sigmoid(i_z + h_z)
        n = jnp.tanh(i_n + r * h_n)
        h_new = (1.0 - z) * n + z * h
        return h_new, h_new

    h0 = jnp.zeros((emb_x.shape[1], H), jnp.float32)
    _, outs = jax.lax.scan(step, h0, emb_x)
    return outs


if __name__ == "__main__":
    # Small shapes consistent with the module's forward:
    #   vocab (in_size) = 50, emb_size = 128, latent_size = 32, seq = 8, batch = 4
    VOCAB, EMB, LATENT = 50, 128, 32
    T, B = 8, 4

    key = jax.random.PRNGKey(0)
    k_emb, k_wih, k_whh, k_bih, k_bhh, k_x = jax.random.split(key, 6)

    # PyTorch-style init: Embedding ~ N(0,1), GRU params ~ U(-1/sqrt(H), 1/sqrt(H)).
    bound = 1.0 / jnp.sqrt(jnp.float32(LATENT))
    emb_table = jax.random.normal(k_emb, (VOCAB, EMB), jnp.float32)
    w_ih = jax.random.uniform(k_wih, (3 * LATENT, EMB), jnp.float32, -bound, bound)
    w_hh = jax.random.uniform(k_whh, (3 * LATENT, LATENT), jnp.float32, -bound, bound)
    b_ih = jax.random.uniform(k_bih, (3 * LATENT,), jnp.float32, -bound, bound)
    b_hh = jax.random.uniform(k_bhh, (3 * LATENT,), jnp.float32, -bound, bound)

    # Token ids, seq-major (T, B), int32.
    x_tokens = jax.random.randint(k_x, (T, B), 0, VOCAB, dtype=jnp.int32)

    # One-time preprocessing (module init), then the single-kernel forward.
    params = prepare_seq2seq_params(emb_table, w_ih, w_hh, b_ih, b_hh)
    out = jax.block_until_ready(seq2seq_forward(x_tokens, params))

    # Validate against a pure-JAX reference of the same math.
    emb_x = jnp.take(emb_table, x_tokens, axis=0)
    ref = jax.block_until_ready(_gru_reference(emb_x, w_ih, w_hh, b_ih, b_hh))

    assert out.shape == (T, B, LATENT), out.shape
    max_err = float(jnp.abs(out - ref).max())
    assert jnp.allclose(out, ref, atol=2e-5, rtol=2e-5), max_err

    print("KERNEL_OK")
</pallas_src>

<mosaic_0001>
module attributes {stable_mosaic.version = 11 : i64} {
  func.func @_seq2seq_gru_kernel(%arg0: memref<8x4xi32, #tpu.memory_space<smem>>, %arg1: memref<50x1x128xf32, #tpu.memory_space<vmem>>, %arg2: memref<32x128xf32, #tpu.memory_space<vmem>>, %arg3: memref<1x32xf32, #tpu.memory_space<vmem>>, %arg4: memref<8x4x32xf32, #tpu.memory_space<vmem>>, %arg5: memref<8x4x128xf32, #tpu.memory_space<vmem>>) attributes {dimension_semantics = [], scalar_prefetch = 0 : i64, scratch_operands = 1 : i64, tpu.core_type = #tpu.core_type<tc>} {
    %c0 = arith.constant 0 : index
    %c0_0 = arith.constant 0 : index
    %0 = memref.load %arg0[%c0, %c0_0] : memref<8x4xi32, #tpu.memory_space<smem>>
    %1 = arith.index_cast %0 : i32 to index
    %c0_1 = arith.constant 0 : index
    %c0_2 = arith.constant 0 : index
    %2 = vector.load %arg1[%1, %c0_1, %c0_2] : memref<50x1x128xf32, #tpu.memory_space<vmem>>, vector<1x1x128xf32>
    %3 = vector.shape_cast %2 : vector<1x1x128xf32> to vector<1x128xf32>
    %c0_3 = arith.constant 0 : index
    %c0_4 = arith.constant 0 : index
    %c0_5 = arith.constant 0 : index
    %4 = vector.load %arg5[%c0_3, %c0_4, %c0_5] : memref<8x4x128xf32, #tpu.memory_space<vmem>>, vector<1x1x128xf32>
    %5 = vector.shape_cast %4 : vector<1x1x128xf32> to vector<1x128xf32>
    %6 = vector.shape_cast %3 : vector<1x128xf32> to vector<1x1x128xf32>
    tpu.vector_store %arg5[%c0_3, %c0_4, %c0_5], %6 {strides = array<i32>} : memref<8x4x128xf32, #tpu.memory_space<vmem>>, vector<1x1x128xf32>,
    %c0_6 = arith.constant 0 : index
    %c1 = arith.constant 1 : index
    %7 = memref.load %arg0[%c0_6, %c1] : memref<8x4xi32, #tpu.memory_space<smem>>
    %8 = arith.index_cast %7 : i32 to index
    %c0_7 = arith.constant 0 : index
    %c0_8 = arith.constant 0 : index
    %9 = vector.load %arg1[%8, %c0_7, %c0_8] : memref<50x1x128xf32, #tpu.memory_space<vmem>>, vector<1x1x128xf32>
    %10 = vector.shape_cast %9 : vector<1x1x128xf32> to vector<1x128xf32>
    %c0_9 = arith.constant 0 : index
    %c1_10 = arith.constant 1 : index
    %c0_11 = arith.constant 0 : index
    %11 = vector.load %arg5[%c0_9, %c1_10, %c0_11] : memref<8x4x128xf32, #tpu.memory_space<vmem>>, vector<1x1x128xf32>
    %12 = vector.shape_cast %11 : vector<1x1x128xf32> to vector<1x128xf32>
    %13 = vector.shape_cast %10 : vector<1x128xf32> to vector<1x1x128xf32>
    tpu.vector_store %arg5[%c0_9, %c1_10, %c0_11], %13 {strides = array<i32>} : memref<8x4x128xf32, #tpu.memory_space<vmem>>, vector<1x1x128xf32>,
    %c0_12 = arith.constant 0 : index
    %c2 = arith.constant 2 : index
    %14 = memref.load %arg0[%c0_12, %c2] : memref<8x4xi32, #tpu.memory_space<smem>>
    %15 = arith.index_cast %14 : i32 to index
    %c0_13 = arith.constant 0 : index
    %c0_14 = arith.constant 0 : index
    %16 = vector.load %arg1[%15, %c0_13, %c0_14] : memref<50x1x128xf32, #tpu.memory_space<vmem>>, vector<1x1x128xf32>
    %17 = vector.shape_cast %16 : vector<1x1x128xf32> to vector<1x128xf32>
    %c0_15 = arith.constant 0 : index
    %c2_16 = arith.constant 2 : index
    %c0_17 = arith.constant 0 : index
    %18 = vector.load %arg5[%c0_15, %c2_16, %c0_17] : memref<8x4x128xf32, #tpu.memory_space<vmem>>, vector<1x1x128xf32>
    %19 = vector.shape_cast %18 : vector<1x1x128xf32> to vector<1x128xf32>
    %20 = vector.shape_cast %17 : vector<1x128xf32> to vector<1x1x128xf32>
    tpu.vector_store %arg5[%c0_15, %c2_16, %c0_17], %20 {strides = array<i32>} : memref<8x4x128xf32, #tpu.memory_space<vmem>>, vector<1x1x128xf32>,
    %c0_18 = arith.constant 0 : index
    %c3 = arith.constant 3 : index
    %21 = memref.load %arg0[%c0_18, %c3] : memref<8x4xi32, #tpu.memory_space<smem>>
    %22 = arith.index_cast %21 : i32 to index
    %c0_19 = arith.constant 0 : index
    %c0_20 = arith.constant 0 : index
    %23 = vector.load %arg1[%22, %c0_19, %c0_20] : memref<50x1x128xf32, #tpu.memory_space<vmem>>, vector<1x1x128xf32>
    %24 = vector.shape_cast %23 : vector<1x1x128xf32> to vector<1x128xf32>
    %c0_21 = arith.constant 0 : index
    %c3_22 = arith.constant 3 : index
    %c0_23 = arith.constant 0 : index
    %25 = vector.load %arg5[%c0_21, %c3_22, %c0_23] : memref<8x4x128xf32, #tpu.memory_space<vmem>>, vector<1x1x128xf32>
    %26 = vector.shape_cast %25 : vector<1x1x128xf32> to vector<1x128xf32>
    %27 = vector.shape_cast %24 : vector<1x128xf32> to vector<1x1x128xf32>
    tpu.vector_store %arg5[%c0_21, %c3_22, %c0_23], %27 {strides = array<i32>} : memref<8x4x128xf32, #tpu.memory_space<vmem>>, vector<1x1x128xf32>,
    %c1_24 = arith.constant 1 : index
    %c0_25 = arith.constant 0 : index
    %28 = memref.load %arg0[%c1_24, %c0_25] : memref<8x4xi32, #tpu.memory_space<smem>>
    %29 = arith.index_cast %28 : i32 to index
    %c0_26 = arith.constant 0 : index
    %c0_27 = arith.constant 0 : index
    %30 = vector.load %arg1[%29, %c0_26, %c0_27] : memref<50x1x128xf32, #tpu.memory_space<vmem>>, vector<1x1x128xf32>
    %31 = vector.shape_cast %30 : vector<1x1x128xf32> to vector<1x128xf32>
    %c1_28 = arith.constant 1 : index
    %c0_29 = arith.constant 0 : index
    %c0_30 = arith.constant 0 : index
    %32 = vector.load %arg5[%c1_28, %c0_29, %c0_30] : memref<8x4x128xf32, #tpu.memory_space<vmem>>, vector<1x1x128xf32>
    %33 = vector.shape_cast %32 : vector<1x1x128xf32> to vector<1x128xf32>
    %34 = vector.shape_cast %31 : vector<1x128xf32> to vector<1x1x128xf32>
    tpu.vector_store %arg5[%c1_28, %c0_29, %c0_30], %34 {strides = array<i32>} : memref<8x4x128xf32, #tpu.memory_space<vmem>>, vector<1x1x128xf32>,
    %c1_31 = arith.constant 1 : index
    %c1_32 = arith.constant 1 : index
    %35 = memref.load %arg0[%c1_31, %c1_32] : memref<8x4xi32, #tpu.memory_space<smem>>
    %36 = arith.index_cast %35 : i32 to index
    %c0_33 = arith.constant 0 : index
    %c0_34 = arith.constant 0 : index
    %37 = vector.load %arg1[%36, %c0_33, %c0_34] : memref<50x1x128xf32, #tpu.memory_space<vmem>>, vector<1x1x128xf32>
    %38 = vector.shape_cast %37 : vector<1x1x128xf32> to vector<1x128xf32>
    %c1_35 = arith.constant 1 : index
    %c1_36 = arith.constant 1 : index
    %c0_37 = arith.constant 0 : index
    %39 = vector.load %arg5[%c1_35, %c1_36, %c0_37] : memref<8x4x128xf32, #tpu.memory_space<vmem>>, vector<1x1x128xf32>
    %40 = vector.shape_cast %39 : vector<1x1x128xf32> to vector<1x128xf32>
    %41 = vector.shape_cast %38 : vector<1x128xf32> to vector<1x1x128xf32>
    tpu.vector_store %arg5[%c1_35, %c1_36, %c0_37], %41 {strides = array<i32>} : memref<8x4x128xf32, #tpu.memory_space<vmem>>, vector<1x1x128xf32>,
    %c1_38 = arith.constant 1 : index
    %c2_39 = arith.constant 2 : index
    %42 = memref.load %arg0[%c1_38, %c2_39] : memref<8x4xi32, #tpu.memory_space<smem>>
    %43 = arith.index_cast %42 : i32 to index
    %c0_40 = arith.constant 0 : index
    %c0_41 = arith.constant 0 : index
    %44 = vector.load %arg1[%43, %c0_40, %c0_41] : memref<50x1x128xf32, #tpu.memory_space<vmem>>, vector<1x1x128xf32>
    %45 = vector.shape_cast %44 : vector<1x1x128xf32> to vector<1x128xf32>
    %c1_42 = arith.constant 1 : index
    %c2_43 = arith.constant 2 : index
    %c0_44 = arith.constant 0 : index
    %46 = vector.load %arg5[%c1_42, %c2_43, %c0_44] : memref<8x4x128xf32, #tpu.memory_space<vmem>>, vector<1x1x128xf32>
    %47 = vector.shape_cast %46 : vector<1x1x128xf32> to vector<1x128xf32>
    %48 = vector.shape_cast %45 : vector<1x128xf32> to vector<1x1x128xf32>
    tpu.vector_store %arg5[%c1_42, %c2_43, %c0_44], %48 {strides = array<i32>} : memref<8x4x128xf32, #tpu.memory_space<vmem>>, vector<1x1x128xf32>,
    %c1_45 = arith.constant 1 : index
    %c3_46 = arith.constant 3 : index
    %49 = memref.load %arg0[%c1_45, %c3_46] : memref<8x4xi32, #tpu.memory_space<smem>>
    %50 = arith.index_cast %49 : i32 to index
    %c0_47 = arith.constant 0 : index
    %c0_48 = arith.constant 0 : index
    %51 = vector.load %arg1[%50, %c0_47, %c0_48] : memref<50x1x128xf32, #tpu.memory_space<vmem>>, vector<1x1x128xf32>
    %52 = vector.shape_cast %51 : vector<1x1x128xf32> to vector<1x128xf32>
    %c1_49 = arith.constant 1 : index
    %c3_50 = arith.constant 3 : index
    %c0_51 = arith.constant 0 : index
    %53 = vector.load %arg5[%c1_49, %c3_50, %c0_51] : memref<8x4x128xf32, #tpu.memory_space<vmem>>, vector<1x1x128xf32>
    %54 = vector.shape_cast %53 : vector<1x1x128xf32> to vector<1x128xf32>
    %55 = vector.shape_cast %52 : vector<1x128xf32> to vector<1x1x128xf32>
    tpu.vector_store %arg5[%c1_49, %c3_50, %c0_51], %55 {strides = array<i32>} : memref<8x4x128xf32, #tpu.memory_space<vmem>>, vector<1x1x128xf32>,
    %c2_52 = arith.constant 2 : index
    %c0_53 = arith.constant 0 : index
    %56 = memref.load %arg0[%c2_52, %c0_53] : memref<8x4xi32, #tpu.memory_space<smem>>
    %57 = arith.index_cast %56 : i32 to index
    %c0_54 = arith.constant 0 : index
    %c0_55 = arith.constant 0 : index
    %58 = vector.load %arg1[%57, %c0_54, %c0_55] : memref<50x1x128xf32, #tpu.memory_space<vmem>>, vector<1x1x128xf32>
    %59 = vector.shape_cast %58 : vector<1x1x128xf32> to vector<1x128xf32>
    %c2_56 = arith.constant 2 : index
    %c0_57 = arith.constant 0 : index
    %c0_58 = arith.constant 0 : index
    %60 = vector.load %arg5[%c2_56, %c0_57, %c0_58] : memref<8x4x128xf32, #tpu.memory_space<vmem>>, vector<1x1x128xf32>
    %61 = vector.shape_cast %60 : vector<1x1x128xf32> to vector<1x128xf32>
    %62 = vector.shape_cast %59 : vector<1x128xf32> to vector<1x1x128xf32>
    tpu.vector_store %arg5[%c2_56, %c0_57, %c0_58], %62 {strides = array<i32>} : memref<8x4x128xf32, #tpu.memory_space<vmem>>, vector<1x1x128xf32>,
    %c2_59 = arith.constant 2 : index
    %c1_60 = arith.constant 1 : index
    %63 = memref.load %arg0[%c2_59, %c1_60] : memref<8x4xi32, #tpu.memory_space<smem>>
    %64 = arith.index_cast %63 : i32 to index
    %c0_61 = arith.constant 0 : index
    %c0_62 = arith.constant 0 : index
    %65 = vector.load %arg1[%64, %c0_61, %c0_62] : memref<50x1x128xf32, #tpu.memory_space<vmem>>, vector<1x1x128xf32>
    %66 = vector.shape_cast %65 : vector<1x1x128xf32> to vector<1x128xf32>
    %c2_63 = arith.constant 2 : index
    %c1_64 = arith.constant 1 : index
    %c0_65 = arith.constant 0 : index
    %67 = vector.load %arg5[%c2_63, %c1_64, %c0_65] : memref<8x4x128xf32, #tpu.memory_space<vmem>>, vector<1x1x128xf32>
    %68 = vector.shape_cast %67 : vector<1x1x128xf32> to vector<1x128xf32>
    %69 = vector.shape_cast %66 : vector<1x128xf32> to vector<1x1x128xf32>
    tpu.vector_store %arg5[%c2_63, %c1_64, %c0_65], %69 {strides = array<i32>} : memref<8x4x128xf32, #tpu.memory_space<vmem>>, vector<1x1x128xf32>,
    %c2_66 = arith.constant 2 : index
    %c2_67 = arith.constant 2 : index
    %70 = memref.load %arg0[%c2_66, %c2_67] : memref<8x4xi32, #tpu.memory_space<smem>>
    %71 = arith.index_cast %70 : i32 to index
    %c0_68 = arith.constant 0 : index
    %c0_69 = arith.constant 0 : index
    %72 = vector.load %arg1[%71, %c0_68, %c0_69] : memref<50x1x128xf32, #tpu.memory_space<vmem>>, vector<1x1x128xf32>
    %73 = vector.shape_cast %72 : vector<1x1x128xf32> to vector<1x128xf32>
    %c2_70 = arith.constant 2 : index
    %c2_71 = arith.constant 2 : index
    %c0_72 = arith.constant 0 : index
    %74 = vector.load %arg5[%c2_70, %c2_71, %c0_72] : memref<8x4x128xf32, #tpu.memory_space<vmem>>, vector<1x1x128xf32>
    %75 = vector.shape_cast %74 : vector<1x1x128xf32> to vector<1x128xf32>
    %76 = vector.shape_cast %73 : vector<1x128xf32> to vector<1x1x128xf32>
    tpu.vector_store %arg5[%c2_70, %c2_71, %c0_72], %76 {strides = array<i32>} : memref<8x4x128xf32, #tpu.memory_space<vmem>>, vector<1x1x128xf32>,
    %c2_73 = arith.constant 2 : index
    %c3_74 = arith.constant 3 : index
    %77 = memref.load %arg0[%c2_73, %c3_74] : memref<8x4xi32, #tpu.memory_space<smem>>
    %78 = arith.index_cast %77 : i32 to index
    %c0_75 = arith.constant 0 : index
    %c0_76 = arith.constant 0 : index
    %79 = vector.load %arg1[%78, %c0_75, %c0_76] : memref<50x1x128xf32, #tpu.memory_space<vmem>>, vector<1x1x128xf32>
    %80 = vector.shape_cast %79 : vector<1x1x128xf32> to vector<1x128xf32>
    %c2_77 = arith.constant 2 : index
    %c3_78 = arith.constant 3 : index
    %c0_79 = arith.constant 0 : index
    %81 = vector.load %arg5[%c2_77, %c3_78, %c0_79] : memref<8x4x128xf32, #tpu.memory_space<vmem>>, vector<1x1x128xf32>
    %82 = vector.shape_cast %81 : vector<1x1x128xf32> to vector<1x128xf32>
    %83 = vector.shape_cast %80 : vector<1x128xf32> to vector<1x1x128xf32>
    tpu.vector_store %arg5[%c2_77, %c3_78, %c0_79], %83 {strides = array<i32>} : memref<8x4x128xf32, #tpu.memory_space<vmem>>, vector<1x1x128xf32>,
    %c3_80 = arith.constant 3 : index
    %c0_81 = arith.constant 0 : index
    %84 = memref.load %arg0[%c3_80, %c0_81] : memref<8x4xi32, #tpu.memory_space<smem>>
    %85 = arith.index_cast %84 : i32 to index
    %c0_82 = arith.constant 0 : index
    %c0_83 = arith.constant 0 : index
    %86 = vector.load %arg1[%85, %c0_82, %c0_83] : memref<50x1x128xf32, #tpu.memory_space<vmem>>, vector<1x1x128xf32>
    %87 = vector.shape_cast %86 : vector<1x1x128xf32> to vector<1x128xf32>
    %c3_84 = arith.constant 3 : index
    %c0_85 = arith.constant 0 : index
    %c0_86 = arith.constant 0 : index
    %88 = vector.load %arg5[%c3_84, %c0_85, %c0_86] : memref<8x4x128xf32, #tpu.memory_space<vmem>>, vector<1x1x128xf32>
    %89 = vector.shape_cast %88 : vector<1x1x128xf32> to vector<1x128xf32>
    %90 = vector.shape_cast %87 : vector<1x128xf32> to vector<1x1x128xf32>
    tpu.vector_store %arg5[%c3_84, %c0_85, %c0_86], %90 {strides = array<i32>} : memref<8x4x128xf32, #tpu.memory_space<vmem>>, vector<1x1x128xf32>,
    %c3_87 = arith.constant 3 : index
    %c1_88 = arith.constant 1 : index
    %91 = memref.load %arg0[%c3_87, %c1_88] : memref<8x4xi32, #tpu.memory_space<smem>>
    %92 = arith.index_cast %91 : i32 to index
    %c0_89 = arith.constant 0 : index
    %c0_90 = arith.constant 0 : index
    %93 = vector.load %arg1[%92, %c0_89, %c0_90] : memref<50x1x128xf32, #tpu.memory_space<vmem>>, vector<1x1x128xf32>
    %94 = vector.shape_cast %93 : vector<1x1x128xf32> to vector<1x128xf32>
    %c3_91 = arith.constant 3 : index
    %c1_92 = arith.constant 1 : index
    %c0_93 = arith.constant 0 : index
    %95 = vector.load %arg5[%c3_91, %c1_92, %c0_93] : memref<8x4x128xf32, #tpu.memory_space<vmem>>, vector<1x1x128xf32>
    %96 = vector.shape_cast %95 : vector<1x1x128xf32> to vector<1x128xf32>
    %97 = vector.shape_cast %94 : vector<1x128xf32> to vector<1x1x128xf32>
    tpu.vector_store %arg5[%c3_91, %c1_92, %c0_93], %97 {strides = array<i32>} : memref<8x4x128xf32, #tpu.memory_space<vmem>>, vector<1x1x128xf32>,
    %c3_94 = arith.constant 3 : index
    %c2_95 = arith.constant 2 : index
    %98 = memref.load %arg0[%c3_94, %c2_95] : memref<8x4xi32, #tpu.memory_space<smem>>
    %99 = arith.index_cast %98 : i32 to index
    %c0_96 = arith.constant 0 : index
    %c0_97 = arith.constant 0 : index
    %100 = vector.load %arg1[%99, %c0_96, %c0_97] : memref<50x1x128xf32, #tpu.memory_space<vmem>>, vector<1x1x128xf32>
    %101 = vector.shape_cast %100 : vector<1x1x128xf32> to vector<1x128xf32>
    %c3_98 = arith.constant 3 : index
    %c2_99 = arith.constant 2 : index
    %c0_100 = arith.constant 0 : index
    %102 = vector.load %arg5[%c3_98, %c2_99, %c0_100] : memref<8x4x128xf32, #tpu.memory_space<vmem>>, vector<1x1x128xf32>
    %103 = vector.shape_cast %102 : vector<1x1x128xf32> to vector<1x128xf32>
    %104 = vector.shape_cast %101 : vector<1x128xf32> to vector<1x1x128xf32>
    tpu.vector_store %arg5[%c3_98, %c2_99, %c0_100], %104 {strides = array<i32>} : memref<8x4x128xf32, #tpu.memory_space<vmem>>, vector<1x1x128xf32>,
    %c3_101 = arith.constant 3 : index
    %c3_102 = arith.constant 3 : index
    %105 = memref.load %arg0[%c3_101, %c3_102] : memref<8x4xi32, #tpu.memory_space<smem>>
    %106 = arith.index_cast %105 : i32 to index
    %c0_103 = arith.constant 0 : index
    %c0_104 = arith.constant 0 : index
    %107 = vector.load %arg1[%106, %c0_103, %c0_104] : memref<50x1x128xf32, #tpu.memory_space<vmem>>, vector<1x1x128xf32>
    %108 = vector.shape_cast %107 : vector<1x1x128xf32> to vector<1x128xf32>
    %c3_105 = arith.constant 3 : index
    %c3_106 = arith.constant 3 : index
    %c0_107 = arith.constant 0 : index
    %109 = vector.load %arg5[%c3_105, %c3_106, %c0_107] : memref<8x4x128xf32, #tpu.memory_space<vmem>>, vector<1x1x128xf32>
    %110 = vector.shape_cast %109 : vector<1x1x128xf32> to vector<1x128xf32>
    %111 = vector.shape_cast %108 : vector<1x128xf32> to vector<1x1x128xf32>
    tpu.vector_store %arg5[%c3_105, %c3_106, %c0_107], %111 {strides = array<i32>} : memref<8x4x128xf32, #tpu.memory_space<vmem>>, vector<1x1x128xf32>,
    %c4 = arith.constant 4 : index
    %c0_108 = arith.constant 0 : index
    %112 = memref.load %arg0[%c4, %c0_108] : memref<8x4xi32, #tpu.memory_space<smem>>
    %113 = arith.index_cast %112 : i32 to index
    %c0_109 = arith.constant 0 : index
    %c0_110 = arith.constant 0 : index
    %114 = vector.load %arg1[%113, %c0_109, %c0_110] : memref<50x1x128xf32, #tpu.memory_space<vmem>>, vector<1x1x128xf32>
    %115 = vector.shape_cast %114 : vector<1x1x128xf32> to vector<1x128xf32>
    %c4_111 = arith.constant 4 : index
    %c0_112 = arith.constant 0 : index
    %c0_113 = arith.constant 0 : index
    %116 = vector.load %arg5[%c4_111, %c0_112, %c0_113] : memref<8x4x128xf32, #tpu.memory_space<vmem>>, vector<1x1x128xf32>
    %117 = vector.shape_cast %116 : vector<1x1x128xf32> to vector<1x128xf32>
    %118 = vector.shape_cast %115 : vector<1x128xf32> to vector<1x1x128xf32>
    tpu.vector_store %arg5[%c4_111, %c0_112, %c0_113], %118 {strides = array<i32>} : memref<8x4x128xf32, #tpu.memory_space<vmem>>, vector<1x1x128xf32>,
    %c4_114 = arith.constant 4 : index
    %c1_115 = arith.constant 1 : index
    %119 = memref.load %arg0[%c4_114, %c1_115] : memref<8x4xi32, #tpu.memory_space<smem>>
    %120 = arith.index_cast %119 : i32 to index
    %c0_116 = arith.constant 0 : index
    %c0_117 = arith.constant 0 : index
    %121 = vector.load %arg1[%120, %c0_116, %c0_117] : memref<50x1x128xf32, #tpu.memory_space<vmem>>, vector<1x1x128xf32>
    %122 = vector.shape_cast %121 : vector<1x1x128xf32> to vector<1x128xf32>
    %c4_118 = arith.constant 4 : index
    %c1_119 = arith.constant 1 : index
    %c0_120 = arith.constant 0 : index
    %123 = vector.load %arg5[%c4_118, %c1_119, %c0_120] : memref<8x4x128xf32, #tpu.memory_space<vmem>>, vector<1x1x128xf32>
    %124 = vector.shape_cast %123 : vector<1x1x128xf32> to vector<1x128xf32>
    %125 = vector.shape_cast %122 : vector<1x128xf32> to vector<1x1x128xf32>
    tpu.vector_store %arg5[%c4_118, %c1_119, %c0_120], %125 {strides = array<i32>} : memref<8x4x128xf32, #tpu.memory_space<vmem>>, vector<1x1x128xf32>,
    %c4_121 = arith.constant 4 : index
    %c2_122 = arith.constant 2 : index
    %126 = memref.load %arg0[%c4_121, %c2_122] : memref<8x4xi32, #tpu.memory_space<smem>>
    %127 = arith.index_cast %126 : i32 to index
    %c0_123 = arith.constant 0 : index
    %c0_124 = arith.constant 0 : index
    %128 = vector.load %arg1[%127, %c0_123, %c0_124] : memref<50x1x128xf32, #tpu.memory_space<vmem>>, vector<1x1x128xf32>
    %129 = vector.shape_cast %128 : vector<1x1x128xf32> to vector<1x128xf32>
    %c4_125 = arith.constant 4 : index
    %c2_126 = arith.constant 2 : index
    %c0_127 = arith.constant 0 : index
    %130 = vector.load %arg5[%c4_125, %c2_126, %c0_127] : memref<8x4x128xf32, #tpu.memory_space<vmem>>, vector<1x1x128xf32>
    %131 = vector.shape_cast %130 : vector<1x1x128xf32> to vector<1x128xf32>
    %132 = vector.shape_cast %129 : vector<1x128xf32> to vector<1x1x128xf32>
    tpu.vector_store %arg5[%c4_125, %c2_126, %c0_127], %132 {strides = array<i32>} : memref<8x4x128xf32, #tpu.memory_space<vmem>>, vector<1x1x128xf32>,
    %c4_128 = arith.constant 4 : index
    %c3_129 = arith.constant 3 : index
    %133 = memref.load %arg0[%c4_128, %c3_129] : memref<8x4xi32, #tpu.memory_space<smem>>
    %134 = arith.index_cast %133 : i32 to index
    %c0_130 = arith.constant 0 : index
    %c0_131 = arith.constant 0 : index
    %135 = vector.load %arg1[%134, %c0_130, %c0_131] : memref<50x1x128xf32, #tpu.memory_space<vmem>>, vector<1x1x128xf32>
    %136 = vector.shape_cast %135 : vector<1x1x128xf32> to vector<1x128xf32>
    %c4_132 = arith.constant 4 : index
    %c3_133 = arith.constant 3 : index
    %c0_134 = arith.constant 0 : index
    %137 = vector.load %arg5[%c4_132, %c3_133, %c0_134] : memref<8x4x128xf32, #tpu.memory_space<vmem>>, vector<1x1x128xf32>
    %138 = vector.shape_cast %137 : vector<1x1x128xf32> to vector<1x128xf32>
    %139 = vector.shape_cast %136 : vector<1x128xf32> to vector<1x1x128xf32>
    tpu.vector_store %arg5[%c4_132, %c3_133, %c0_134], %139 {strides = array<i32>} : memref<8x4x128xf32, #tpu.memory_space<vmem>>, vector<1x1x128xf32>,
    %c5 = arith.constant 5 : index
    %c0_135 = arith.constant 0 : index
    %140 = memref.load %arg0[%c5, %c0_135] : memref<8x4xi32, #tpu.memory_space<smem>>
    %141 = arith.index_cast %140 : i32 to index
    %c0_136 = arith.constant 0 : index
    %c0_137 = arith.constant 0 : index
    %142 = vector.load %arg1[%141, %c0_136, %c0_137] : memref<50x1x128xf32, #tpu.memory_space<vmem>>, vector<1x1x128xf32>
    %143 = vector.shape_cast %142 : vector<1x1x128xf32> to vector<1x128xf32>
    %c5_138 = arith.constant 5 : index
    %c0_139 = arith.constant 0 : index
    %c0_140 = arith.constant 0 : index
    %144 = vector.load %arg5[%c5_138, %c0_139, %c0_140] : memref<8x4x128xf32, #tpu.memory_space<vmem>>, vector<1x1x128xf32>
    %145 = vector.shape_cast %144 : vector<1x1x128xf32> to vector<1x128xf32>
    %146 = vector.shape_cast %143 : vector<1x128xf32> to vector<1x1x128xf32>
    tpu.vector_store %arg5[%c5_138, %c0_139, %c0_140], %146 {strides = array<i32>} : memref<8x4x128xf32, #tpu.memory_space<vmem>>, vector<1x1x128xf32>,
    %c5_141 = arith.constant 5 : index
    %c1_142 = arith.constant 1 : index
    %147 = memref.load %arg0[%c5_141, %c1_142] : memref<8x4xi32, #tpu.memory_space<smem>>
    %148 = arith.index_cast %147 : i32 to index
    %c0_143 = arith.constant 0 : index
    %c0_144 = arith.constant 0 : index
    %149 = vector.load %arg1[%148, %c0_143, %c0_144] : memref<50x1x128xf32, #tpu.memory_space<vmem>>, vector<1x1x128xf32>
    %150 = vector.shape_cast %149 : vector<1x1x128xf32> to vector<1x128xf32>
    %c5_145 = arith.constant 5 : index
    %c1_146 = arith.constant 1 : index
    %c0_147 = arith.constant 0 : index
    %151 = vector.load %arg5[%c5_145, %c1_146, %c0_147] : memref<8x4x128xf32, #tpu.memory_space<vmem>>, vector<1x1x128xf32>
    %152 = vector.shape_cast %151 : vector<1x1x128xf32> to vector<1x128xf32>
    %153 = vector.shape_cast %150 : vector<1x128xf32> to vector<1x1x128xf32>
    tpu.vector_store %arg5[%c5_145, %c1_146, %c0_147], %153 {strides = array<i32>} : memref<8x4x128xf32, #tpu.memory_space<vmem>>, vector<1x1x128xf32>,
    %c5_148 = arith.constant 5 : index
    %c2_149 = arith.constant 2 : index
    %154 = memref.load %arg0[%c5_148, %c2_149] : memref<8x4xi32, #tpu.memory_space<smem>>
    %155 = arith.index_cast %154 : i32 to index
    %c0_150 = arith.constant 0 : index
    %c0_151 = arith.constant 0 : index
    %156 = vector.load %arg1[%155, %c0_150, %c0_151] : memref<50x1x128xf32, #tpu.memory_space<vmem>>, vector<1x1x128xf32>
    %157 = vector.shape_cast %156 : vector<1x1x128xf32> to vector<1x128xf32>
    %c5_152 = arith.constant 5 : index
    %c2_153 = arith.constant 2 : index
    %c0_154 = arith.constant 0 : index
    %158 = vector.load %arg5[%c5_152, %c2_153, %c0_154] : memref<8x4x128xf32, #tpu.memory_space<vmem>>, vector<1x1x128xf32>
    %159 = vector.shape_cast %158 : vector<1x1x128xf32> to vector<1x128xf32>
    %160 = vector.shape_cast %157 : vector<1x128xf32> to vector<1x1x128xf32>
    tpu.vector_store %arg5[%c5_152, %c2_153, %c0_154], %160 {strides = array<i32>} : memref<8x4x128xf32, #tpu.memory_space<vmem>>, vector<1x1x128xf32>,
    %c5_155 = arith.constant 5 : index
    %c3_156 = arith.constant 3 : index
    %161 = memref.load %arg0[%c5_155, %c3_156] : memref<8x4xi32, #tpu.memory_space<smem>>
    %162 = arith.index_cast %161 : i32 to index
    %c0_157 = arith.constant 0 : index
    %c0_158 = arith.constant 0 : index
    %163 = vector.load %arg1[%162, %c0_157, %c0_158] : memref<50x1x128xf32, #tpu.memory_space<vmem>>, vector<1x1x128xf32>
    %164 = vector.shape_cast %163 : vector<1x1x128xf32> to vector<1x128xf32>
    %c5_159 = arith.constant 5 : index
    %c3_160 = arith.constant 3 : index
    %c0_161 = arith.constant 0 : index
    %165 = vector.load %arg5[%c5_159, %c3_160, %c0_161] : memref<8x4x128xf32, #tpu.memory_space<vmem>>, vector<1x1x128xf32>
    %166 = vector.shape_cast %165 : vector<1x1x128xf32> to vector<1x128xf32>
    %167 = vector.shape_cast %164 : vector<1x128xf32> to vector<1x1x128xf32>
    tpu.vector_store %arg5[%c5_159, %c3_160, %c0_161], %167 {strides = array<i32>} : memref<8x4x128xf32, #tpu.memory_space<vmem>>, vector<1x1x128xf32>,
    %c6 = arith.constant 6 : index
    %c0_162 = arith.constant 0 : index
    %168 = memref.load %arg0[%c6, %c0_162] : memref<8x4xi32, #tpu.memory_space<smem>>
    %169 = arith.index_cast %168 : i32 to index
    %c0_163 = arith.constant 0 : index
    %c0_164 = arith.constant 0 : index
    %170 = vector.load %arg1[%169, %c0_163, %c0_164] : memref<50x1x128xf32, #tpu.memory_space<vmem>>, vector<1x1x128xf32>
    %171 = vector.shape_cast %170 : vector<1x1x128xf32> to vector<1x128xf32>
    %c6_165 = arith.constant 6 : index
    %c0_166 = arith.constant 0 : index
    %c0_167 = arith.constant 0 : index
    %172 = vector.load %arg5[%c6_165, %c0_166, %c0_167] : memref<8x4x128xf32, #tpu.memory_space<vmem>>, vector<1x1x128xf32>
    %173 = vector.shape_cast %172 : vector<1x1x128xf32> to vector<1x128xf32>
    %174 = vector.shape_cast %171 : vector<1x128xf32> to vector<1x1x128xf32>
    tpu.vector_store %arg5[%c6_165, %c0_166, %c0_167], %174 {strides = array<i32>} : memref<8x4x128xf32, #tpu.memory_space<vmem>>, vector<1x1x128xf32>,
    %c6_168 = arith.constant 6 : index
    %c1_169 = arith.constant 1 : index
    %175 = memref.load %arg0[%c6_168, %c1_169] : memref<8x4xi32, #tpu.memory_space<smem>>
    %176 = arith.index_cast %175 : i32 to index
    %c0_170 = arith.constant 0 : index
    %c0_171 = arith.constant 0 : index
    %177 = vector.load %arg1[%176, %c0_170, %c0_171] : memref<50x1x128xf32, #tpu.memory_space<vmem>>, vector<1x1x128xf32>
    %178 = vector.shape_cast %177 : vector<1x1x128xf32> to vector<1x128xf32>
    %c6_172 = arith.constant 6 : index
    %c1_173 = arith.constant 1 : index
    %c0_174 = arith.constant 0 : index
    %179 = vector.load %arg5[%c6_172, %c1_173, %c0_174] : memref<8x4x128xf32, #tpu.memory_space<vmem>>, vector<1x1x128xf32>
    %180 = vector.shape_cast %179 : vector<1x1x128xf32> to vector<1x128xf32>
    %181 = vector.shape_cast %178 : vector<1x128xf32> to vector<1x1x128xf32>
    tpu.vector_store %arg5[%c6_172, %c1_173, %c0_174], %181 {strides = array<i32>} : memref<8x4x128xf32, #tpu.memory_space<vmem>>, vector<1x1x128xf32>,
    %c6_175 = arith.constant 6 : index
    %c2_176 = arith.constant 2 : index
    %182 = memref.load %arg0[%c6_175, %c2_176] : memref<8x4xi32, #tpu.memory_space<smem>>
    %183 = arith.index_cast %182 : i32 to index
    %c0_177 = arith.constant 0 : index
    %c0_178 = arith.constant 0 : index
    %184 = vector.load %arg1[%183, %c0_177, %c0_178] : memref<50x1x128xf32, #tpu.memory_space<vmem>>, vector<1x1x128xf32>
    %185 = vector.shape_cast %184 : vector<1x1x128xf32> to vector<1x128xf32>
    %c6_179 = arith.constant 6 : index
    %c2_180 = arith.constant 2 : index
    %c0_181 = arith.constant 0 : index
    %186 = vector.load %arg5[%c6_179, %c2_180, %c0_181] : memref<8x4x128xf32, #tpu.memory_space<vmem>>, vector<1x1x128xf32>
    %187 = vector.shape_cast %186 : vector<1x1x128xf32> to vector<1x128xf32>
    %188 = vector.shape_cast %185 : vector<1x128xf32> to vector<1x1x128xf32>
    tpu.vector_store %arg5[%c6_179, %c2_180, %c0_181], %188 {strides = array<i32>} : memref<8x4x128xf32, #tpu.memory_space<vmem>>, vector<1x1x128xf32>,
    %c6_182 = arith.constant 6 : index
    %c3_183 = arith.constant 3 : index
    %189 = memref.load %arg0[%c6_182, %c3_183] : memref<8x4xi32, #tpu.memory_space<smem>>
    %190 = arith.index_cast %189 : i32 to index
    %c0_184 = arith.constant 0 : index
    %c0_185 = arith.constant 0 : index
    %191 = vector.load %arg1[%190, %c0_184, %c0_185] : memref<50x1x128xf32, #tpu.memory_space<vmem>>, vector<1x1x128xf32>
    %192 = vector.shape_cast %191 : vector<1x1x128xf32> to vector<1x128xf32>
    %c6_186 = arith.constant 6 : index
    %c3_187 = arith.constant 3 : index
    %c0_188 = arith.constant 0 : index
    %193 = vector.load %arg5[%c6_186, %c3_187, %c0_188] : memref<8x4x128xf32, #tpu.memory_space<vmem>>, vector<1x1x128xf32>
    %194 = vector.shape_cast %193 : vector<1x1x128xf32> to vector<1x128xf32>
    %195 = vector.shape_cast %192 : vector<1x128xf32> to vector<1x1x128xf32>
    tpu.vector_store %arg5[%c6_186, %c3_187, %c0_188], %195 {strides = array<i32>} : memref<8x4x128xf32, #tpu.memory_space<vmem>>, vector<1x1x128xf32>,
    %c7 = arith.constant 7 : index
    %c0_189 = arith.constant 0 : index
    %196 = memref.load %arg0[%c7, %c0_189] : memref<8x4xi32, #tpu.memory_space<smem>>
    %197 = arith.index_cast %196 : i32 to index
    %c0_190 = arith.constant 0 : index
    %c0_191 = arith.constant 0 : index
    %198 = vector.load %arg1[%197, %c0_190, %c0_191] : memref<50x1x128xf32, #tpu.memory_space<vmem>>, vector<1x1x128xf32>
    %199 = vector.shape_cast %198 : vector<1x1x128xf32> to vector<1x128xf32>
    %c7_192 = arith.constant 7 : index
    %c0_193 = arith.constant 0 : index
    %c0_194 = arith.constant 0 : index
    %200 = vector.load %arg5[%c7_192, %c0_193, %c0_194] : memref<8x4x128xf32, #tpu.memory_space<vmem>>, vector<1x1x128xf32>
    %201 = vector.shape_cast %200 : vector<1x1x128xf32> to vector<1x128xf32>
    %202 = vector.shape_cast %199 : vector<1x128xf32> to vector<1x1x128xf32>
    tpu.vector_store %arg5[%c7_192, %c0_193, %c0_194], %202 {strides = array<i32>} : memref<8x4x128xf32, #tpu.memory_space<vmem>>, vector<1x1x128xf32>,
    %c7_195 = arith.constant 7 : index
    %c1_196 = arith.constant 1 : index
    %203 = memref.load %arg0[%c7_195, %c1_196] : memref<8x4xi32, #tpu.memory_space<smem>>
    %204 = arith.index_cast %203 : i32 to index
    %c0_197 = arith.constant 0 : index
    %c0_198 = arith.constant 0 : index
    %205 = vector.load %arg1[%204, %c0_197, %c0_198] : memref<50x1x128xf32, #tpu.memory_space<vmem>>, vector<1x1x128xf32>
    %206 = vector.shape_cast %205 : vector<1x1x128xf32> to vector<1x128xf32>
    %c7_199 = arith.constant 7 : index
    %c1_200 = arith.constant 1 : index
    %c0_201 = arith.constant 0 : index
    %207 = vector.load %arg5[%c7_199, %c1_200, %c0_201] : memref<8x4x128xf32, #tpu.memory_space<vmem>>, vector<1x1x128xf32>
    %208 = vector.shape_cast %207 : vector<1x1x128xf32> to vector<1x128xf32>
    %209 = vector.shape_cast %206 : vector<1x128xf32> to vector<1x1x128xf32>
    tpu.vector_store %arg5[%c7_199, %c1_200, %c0_201], %209 {strides = array<i32>} : memref<8x4x128xf32, #tpu.memory_space<vmem>>, vector<1x1x128xf32>,
    %c7_202 = arith.constant 7 : index
    %c2_203 = arith.constant 2 : index
    %210 = memref.load %arg0[%c7_202, %c2_203] : memref<8x4xi32, #tpu.memory_space<smem>>
    %211 = arith.index_cast %210 : i32 to index
    %c0_204 = arith.constant 0 : index
    %c0_205 = arith.constant 0 : index
    %212 = vector.load %arg1[%211, %c0_204, %c0_205] : memref<50x1x128xf32, #tpu.memory_space<vmem>>, vector<1x1x128xf32>
    %213 = vector.shape_cast %212 : vector<1x1x128xf32> to vector<1x128xf32>
    %c7_206 = arith.constant 7 : index
    %c2_207 = arith.constant 2 : index
    %c0_208 = arith.constant 0 : index
    %214 = vector.load %arg5[%c7_206, %c2_207, %c0_208] : memref<8x4x128xf32, #tpu.memory_space<vmem>>, vector<1x1x128xf32>
    %215 = vector.shape_cast %214 : vector<1x1x128xf32> to vector<1x128xf32>
    %216 = vector.shape_cast %213 : vector<1x128xf32> to vector<1x1x128xf32>
    tpu.vector_store %arg5[%c7_206, %c2_207, %c0_208], %216 {strides = array<i32>} : memref<8x4x128xf32, #tpu.memory_space<vmem>>, vector<1x1x128xf32>,
    %c7_209 = arith.constant 7 : index
    %c3_210 = arith.constant 3 : index
    %217 = memref.load %arg0[%c7_209, %c3_210] : memref<8x4xi32, #tpu.memory_space<smem>>
    %218 = arith.index_cast %217 : i32 to index
    %c0_211 = arith.constant 0 : index
    %c0_212 = arith.constant 0 : index
    %219 = vector.load %arg1[%218, %c0_211, %c0_212] : memref<50x1x128xf32, #tpu.memory_space<vmem>>, vector<1x1x128xf32>
    %220 = vector.shape_cast %219 : vector<1x1x128xf32> to vector<1x128xf32>
    %c7_213 = arith.constant 7 : index
    %c3_214 = arith.constant 3 : index
    %c0_215 = arith.constant 0 : index
    %221 = vector.load %arg5[%c7_213, %c3_214, %c0_215] : memref<8x4x128xf32, #tpu.memory_space<vmem>>, vector<1x1x128xf32>
    %222 = vector.shape_cast %221 : vector<1x1x128xf32> to vector<1x128xf32>
    %223 = vector.shape_cast %220 : vector<1x128xf32> to vector<1x1x128xf32>
    tpu.vector_store %arg5[%c7_213, %c3_214, %c0_215], %223 {strides = array<i32>} : memref<8x4x128xf32, #tpu.memory_space<vmem>>, vector<1x1x128xf32>,
    %c0_216 = arith.constant 0 : index
    %c0_217 = arith.constant 0 : index
    %224 = vector.load %arg2[%c0_216, %c0_217] : memref<32x128xf32, #tpu.memory_space<vmem>>, vector<32x128xf32>
    %c0_218 = arith.constant 0 : index
    %c0_219 = arith.constant 0 : index
    %225 = vector.load %arg3[%c0_218, %c0_219] : memref<1x32xf32, #tpu.memory_space<vmem>>, vector<1x32xf32>
    %226 = vector.shape_cast %225 : vector<1x32xf32> to vector<1x32xf32>
    %227 = vector.broadcast %226 : vector<1x32xf32> to vector<4x32xf32>
    %cst = arith.constant 0.000000e+00 : f32
    %228 = vector.broadcast %cst : f32 to vector<4x32xf32>
    %c0_i32 = arith.constant 0 : i32
    %229 = arith.index_cast %c0_i32 : i32 to index
    %c0_220 = arith.constant 0 : index
    %c0_221 = arith.constant 0 : index
    %230 = vector.load %arg5[%229, %c0_220, %c0_221] : memref<8x4x128xf32, #tpu.memory_space<vmem>>, vector<1x4x128xf32>
    %231 = vector.shape_cast %230 : vector<1x4x128xf32> to vector<4x128xf32>
    %cst_222 = arith.constant dense<0.000000e+00> : vector<4x128xf32>
    %232 = tpu.matmul %228, %224, %cst_222 {dimension_numbers = #tpu.dot_dimension_numbers<[1], [0], [0], [1], [0, 0, 1, 1], [], []>} : vector<4x32xf32>, vector<32x128xf32>, vector<4x128xf32> -> vector<4x128xf32>
    %233 = arith.addf %231, %232 : vector<4x128xf32>
    %cst_223 = arith.constant 5.000000e-01 : f32
    %234 = vector.broadcast %cst_223 : f32 to vector<4x128xf32>
    %235 = arith.mulf %234, %233 : vector<4x128xf32>
    %236 = math.tanh %235 : vector<4x128xf32>
    %cst_224 = arith.constant 1.000000e+00 : f32
    %237 = vector.broadcast %cst_224 : f32 to vector<4x128xf32>
    %238 = arith.addf %236, %237 : vector<4x128xf32>
    %cst_225 = arith.constant 5.000000e-01 : f32
    %239 = vector.broadcast %cst_225 : f32 to vector<4x128xf32>
    %240 = arith.mulf %239, %238 : vector<4x128xf32>
    %241 = vector.extract_strided_slice %240 {offsets = [0, 0], sizes = [4, 32], strides = [1, 1]} : vector<4x128xf32> to vector<4x32xf32>
    %242 = vector.extract_strided_slice %240 {offsets = [0, 32], sizes = [4, 32], strides = [1, 1]} : vector<4x128xf32> to vector<4x32xf32>
    %243 = vector.extract_strided_slice %231 {offsets = [0, 64], sizes = [4, 32], strides = [1, 1]} : vector<4x128xf32> to vector<4x32xf32>
    %244 = vector.extract_strided_slice %232 {offsets = [0, 64], sizes = [4, 32], strides = [1, 1]} : vector<4x128xf32> to vector<4x32xf32>
    %245 = arith.addf %244, %227 : vector<4x32xf32>
    %246 = arith.mulf %241, %245 : vector<4x32xf32>
    %247 = arith.addf %243, %246 : vector<4x32xf32>
    %248 = math.tanh %247 : vector<4x32xf32>
    %cst_226 = arith.constant 1.000000e+00 : f32
    %249 = vector.broadcast %cst_226 : f32 to vector<4x32xf32>
    %250 = arith.subf %249, %242 : vector<4x32xf32>
    %251 = arith.mulf %250, %248 : vector<4x32xf32>
    %252 = arith.mulf %242, %228 : vector<4x32xf32>
    %253 = arith.addf %251, %252 : vector<4x32xf32>
    %254 = arith.index_cast %c0_i32 : i32 to index
    %c0_227 = arith.constant 0 : index
    %c0_228 = arith.constant 0 : index
    %255 = vector.load %arg4[%254, %c0_227, %c0_228] : memref<8x4x32xf32, #tpu.memory_space<vmem>>, vector<1x4x32xf32>
    %256 = vector.shape_cast %255 : vector<1x4x32xf32> to vector<4x32xf32>
    %257 = vector.shape_cast %253 : vector<4x32xf32> to vector<1x4x32xf32>
    tpu.vector_store %arg4[%254, %c0_227, %c0_228], %257 {strides = array<i32>} : memref<8x4x32xf32, #tpu.memory_space<vmem>>, vector<1x4x32xf32>,
    %c1_i32 = arith.constant 1 : i32
    %258 = arith.index_cast %c1_i32 : i32 to index
    %c0_229 = arith.constant 0 : index
    %c0_230 = arith.constant 0 : index
    %259 = vector.load %arg5[%258, %c0_229, %c0_230] : memref<8x4x128xf32, #tpu.memory_space<vmem>>, vector<1x4x128xf32>
    %260 = vector.shape_cast %259 : vector<1x4x128xf32> to vector<4x128xf32>
    %cst_231 = arith.constant dense<0.000000e+00> : vector<4x128xf32>
    %261 = tpu.matmul %253, %224, %cst_231 {dimension_numbers = #tpu.dot_dimension_numbers<[1], [0], [0], [1], [0, 0, 1, 1], [], []>} : vector<4x32xf32>, vector<32x128xf32>, vector<4x128xf32> -> vector<4x128xf32>
    %262 = arith.addf %260, %261 : vector<4x128xf32>
    %cst_232 = arith.constant 5.000000e-01 : f32
    %263 = vector.broadcast %cst_232 : f32 to vector<4x128xf32>
    %264 = arith.mulf %263, %262 : vector<4x128xf32>
    %265 = math.tanh %264 : vector<4x128xf32>
    %cst_233 = arith.constant 1.000000e+00 : f32
    %266 = vector.broadcast %cst_233 : f32 to vector<4x128xf32>
    %267 = arith.addf %265, %266 : vector<4x128xf32>
    %cst_234 = arith.constant 5.000000e-01 : f32
    %268 = vector.broadcast %cst_234 : f32 to vector<4x128xf32>
    %269 = arith.mulf %268, %267 : vector<4x128xf32>
    %270 = vector.extract_strided_slice %269 {offsets = [0, 0], sizes = [4, 32], strides = [1, 1]} : vector<4x128xf32> to vector<4x32xf32>
    %271 = vector.extract_strided_slice %269 {offsets = [0, 32], sizes = [4, 32], strides = [1, 1]} : vector<4x128xf32> to vector<4x32xf32>
    %272 = vector.extract_strided_slice %260 {offsets = [0, 64], sizes = [4, 32], strides = [1, 1]} : vector<4x128xf32> to vector<4x32xf32>
    %273 = vector.extract_strided_slice %261 {offsets = [0, 64], sizes = [4, 32], strides = [1, 1]} : vector<4x128xf32> to vector<4x32xf32>
    %274 = arith.addf %273, %227 : vector<4x32xf32>
    %275 = arith.mulf %270, %274 : vector<4x32xf32>
    %276 = arith.addf %272, %275 : vector<4x32xf32>
    %277 = math.tanh %276 : vector<4x32xf32>
    %cst_235 = arith.constant 1.000000e+00 : f32
    %278 = vector.broadcast %cst_235 : f32 to vector<4x32xf32>
    %279 = arith.subf %278, %271 : vector<4x32xf32>
    %280 = arith.mulf %279, %277 : vector<4x32xf32>
    %281 = arith.mulf %271, %253 : vector<4x32xf32>
    %282 = arith.addf %280, %281 : vector<4x32xf32>
    %283 = arith.index_cast %c1_i32 : i32 to index
    %c0_236 = arith.constant 0 : index
    %c0_237 = arith.constant 0 : index
    %284 = vector.load %arg4[%283, %c0_236, %c0_237] : memref<8x4x32xf32, #tpu.memory_space<vmem>>, vector<1x4x32xf32>
    %285 = vector.shape_cast %284 : vector<1x4x32xf32> to vector<4x32xf32>
    %286 = vector.shape_cast %282 : vector<4x32xf32> to vector<1x4x32xf32>
    tpu.vector_store %arg4[%283, %c0_236, %c0_237], %286 {strides = array<i32>} : memref<8x4x32xf32, #tpu.memory_space<vmem>>, vector<1x4x32xf32>,
    %c2_i32 = arith.constant 2 : i32
    %287 = arith.index_cast %c2_i32 : i32 to index
    %c0_238 = arith.constant 0 : index
    %c0_239 = arith.constant 0 : index
    %288 = vector.load %arg5[%287, %c0_238, %c0_239] : memref<8x4x128xf32, #tpu.memory_space<vmem>>, vector<1x4x128xf32>
    %289 = vector.shape_cast %288 : vector<1x4x128xf32> to vector<4x128xf32>
    %cst_240 = arith.constant dense<0.000000e+00> : vector<4x128xf32>
    %290 = tpu.matmul %282, %224, %cst_240 {dimension_numbers = #tpu.dot_dimension_numbers<[1], [0], [0], [1], [0, 0, 1, 1], [], []>} : vector<4x32xf32>, vector<32x128xf32>, vector<4x128xf32> -> vector<4x128xf32>
    %291 = arith.addf %289, %290 : vector<4x128xf32>
    %cst_241 = arith.constant 5.000000e-01 : f32
    %292 = vector.broadcast %cst_241 : f32 to vector<4x128xf32>
    %293 = arith.mulf %292, %291 : vector<4x128xf32>
    %294 = math.tanh %293 : vector<4x128xf32>
    %cst_242 = arith.constant 1.000000e+00 : f32
    %295 = vector.broadcast %cst_242 : f32 to vector<4x128xf32>
    %296 = arith.addf %294, %295 : vector<4x128xf32>
    %cst_243 = arith.constant 5.000000e-01 : f32
    %297 = vector.broadcast %cst_243 : f32 to vector<4x128xf32>
    %298 = arith.mulf %297, %296 : vector<4x128xf32>
    %299 = vector.extract_strided_slice %298 {offsets = [0, 0], sizes = [4, 32], strides = [1, 1]} : vector<4x128xf32> to vector<4x32xf32>
    %300 = vector.extract_strided_slice %298 {offsets = [0, 32], sizes = [4, 32], strides = [1, 1]} : vector<4x128xf32> to vector<4x32xf32>
    %301 = vector.extract_strided_slice %289 {offsets = [0, 64], sizes = [4, 32], strides = [1, 1]} : vector<4x128xf32> to vector<4x32xf32>
    %302 = vector.extract_strided_slice %290 {offsets = [0, 64], sizes = [4, 32], strides = [1, 1]} : vector<4x128xf32> to vector<4x32xf32>
    %303 = arith.addf %302, %227 : vector<4x32xf32>
    %304 = arith.mulf %299, %303 : vector<4x32xf32>
    %305 = arith.addf %301, %304 : vector<4x32xf32>
    %306 = math.tanh %305 : vector<4x32xf32>
    %cst_244 = arith.constant 1.000000e+00 : f32
    %307 = vector.broadcast %cst_244 : f32 to vector<4x32xf32>
    %308 = arith.subf %307, %300 : vector<4x32xf32>
    %309 = arith.mulf %308, %306 : vector<4x32xf32>
    %310 = arith.mulf %300, %282 : vector<4x32xf32>
    %311 = arith.addf %309, %310 : vector<4x32xf32>
    %312 = arith.index_cast %c2_i32 : i32 to index
    %c0_245 = arith.constant 0 : index
    %c0_246 = arith.constant 0 : index
    %313 = vector.load %arg4[%312, %c0_245, %c0_246] : memref<8x4x32xf32, #tpu.memory_space<vmem>>, vector<1x4x32xf32>
    %314 = vector.shape_cast %313 : vector<1x4x32xf32> to vector<4x32xf32>
    %315 = vector.shape_cast %311 : vector<4x32xf32> to vector<1x4x32xf32>
    tpu.vector_store %arg4[%312, %c0_245, %c0_246], %315 {strides = array<i32>} : memref<8x4x32xf32, #tpu.memory_space<vmem>>, vector<1x4x32xf32>,
    %c3_i32 = arith.constant 3 : i32
    %316 = arith.index_cast %c3_i32 : i32 to index
    %c0_247 = arith.constant 0 : index
    %c0_248 = arith.constant 0 : index
    %317 = vector.load %arg5[%316, %c0_247, %c0_248] : memref<8x4x128xf32, #tpu.memory_space<vmem>>, vector<1x4x128xf32>
    %318 = vector.shape_cast %317 : vector<1x4x128xf32> to vector<4x128xf32>
    %cst_249 = arith.constant dense<0.000000e+00> : vector<4x128xf32>
    %319 = tpu.matmul %311, %224, %cst_249 {dimension_numbers = #tpu.dot_dimension_numbers<[1], [0], [0], [1], [0, 0, 1, 1], [], []>} : vector<4x32xf32>, vector<32x128xf32>, vector<4x128xf32> -> vector<4x128xf32>
    %320 = arith.addf %318, %319 : vector<4x128xf32>
    %cst_250 = arith.constant 5.000000e-01 : f32
    %321 = vector.broadcast %cst_250 : f32 to vector<4x128xf32>
    %322 = arith.mulf %321, %320 : vector<4x128xf32>
    %323 = math.tanh %322 : vector<4x128xf32>
    %cst_251 = arith.constant 1.000000e+00 : f32
    %324 = vector.broadcast %cst_251 : f32 to vector<4x128xf32>
    %325 = arith.addf %323, %324 : vector<4x128xf32>
    %cst_252 = arith.constant 5.000000e-01 : f32
    %326 = vector.broadcast %cst_252 : f32 to vector<4x128xf32>
    %327 = arith.mulf %326, %325 : vector<4x128xf32>
    %328 = vector.extract_strided_slice %327 {offsets = [0, 0], sizes = [4, 32], strides = [1, 1]} : vector<4x128xf32> to vector<4x32xf32>
    %329 = vector.extract_strided_slice %327 {offsets = [0, 32], sizes = [4, 32], strides = [1, 1]} : vector<4x128xf32> to vector<4x32xf32>
    %330 = vector.extract_strided_slice %318 {offsets = [0, 64], sizes = [4, 32], strides = [1, 1]} : vector<4x128xf32> to vector<4x32xf32>
    %331 = vector.extract_strided_slice %319 {offsets = [0, 64], sizes = [4, 32], strides = [1, 1]} : vector<4x128xf32> to vector<4x32xf32>
    %332 = arith.addf %331, %227 : vector<4x32xf32>
    %333 = arith.mulf %328, %332 : vector<4x32xf32>
    %334 = arith.addf %330, %333 : vector<4x32xf32>
    %335 = math.tanh %334 : vector<4x32xf32>
    %cst_253 = arith.constant 1.000000e+00 : f32
    %336 = vector.broadcast %cst_253 : f32 to vector<4x32xf32>
    %337 = arith.subf %336, %329 : vector<4x32xf32>
    %338 = arith.mulf %337, %335 : vector<4x32xf32>
    %339 = arith.mulf %329, %311 : vector<4x32xf32>
    %340 = arith.addf %338, %339 : vector<4x32xf32>
    %341 = arith.index_cast %c3_i32 : i32 to index
    %c0_254 = arith.constant 0 : index
    %c0_255 = arith.constant 0 : index
    %342 = vector.load %arg4[%341, %c0_254, %c0_255] : memref<8x4x32xf32, #tpu.memory_space<vmem>>, vector<1x4x32xf32>
    %343 = vector.shape_cast %342 : vector<1x4x32xf32> to vector<4x32xf32>
    %344 = vector.shape_cast %340 : vector<4x32xf32> to vector<1x4x32xf32>
    tpu.vector_store %arg4[%341, %c0_254, %c0_255], %344 {strides = array<i32>} : memref<8x4x32xf32, #tpu.memory_space<vmem>>, vector<1x4x32xf32>,
    %c4_i32 = arith.constant 4 : i32
    %345 = arith.index_cast %c4_i32 : i32 to index
    %c0_256 = arith.constant 0 : index
    %c0_257 = arith.constant 0 : index
    %346 = vector.load %arg5[%345, %c0_256, %c0_257] : memref<8x4x128xf32, #tpu.memory_space<vmem>>, vector<1x4x128xf32>
    %347 = vector.shape_cast %346 : vector<1x4x128xf32> to vector<4x128xf32>
    %cst_258 = arith.constant dense<0.000000e+00> : vector<4x128xf32>
    %348 = tpu.matmul %340, %224, %cst_258 {dimension_numbers = #tpu.dot_dimension_numbers<[1], [0], [0], [1], [0, 0, 1, 1], [], []>} : vector<4x32xf32>, vector<32x128xf32>, vector<4x128xf32> -> vector<4x128xf32>
    %349 = arith.addf %347, %348 : vector<4x128xf32>
    %cst_259 = arith.constant 5.000000e-01 : f32
    %350 = vector.broadcast %cst_259 : f32 to vector<4x128xf32>
    %351 = arith.mulf %350, %349 : vector<4x128xf32>
    %352 = math.tanh %351 : vector<4x128xf32>
    %cst_260 = arith.constant 1.000000e+00 : f32
    %353 = vector.broadcast %cst_260 : f32 to vector<4x128xf32>
    %354 = arith.addf %352, %353 : vector<4x128xf32>
    %cst_261 = arith.constant 5.000000e-01 : f32
    %355 = vector.broadcast %cst_261 : f32 to vector<4x128xf32>
    %356 = arith.mulf %355, %354 : vector<4x128xf32>
    %357 = vector.extract_strided_slice %356 {offsets = [0, 0], sizes = [4, 32], strides = [1, 1]} : vector<4x128xf32> to vector<4x32xf32>
    %358 = vector.extract_strided_slice %356 {offsets = [0, 32], sizes = [4, 32], strides = [1, 1]} : vector<4x128xf32> to vector<4x32xf32>
    %359 = vector.extract_strided_slice %347 {offsets = [0, 64], sizes = [4, 32], strides = [1, 1]} : vector<4x128xf32> to vector<4x32xf32>
    %360 = vector.extract_strided_slice %348 {offsets = [0, 64], sizes = [4, 32], strides = [1, 1]} : vector<4x128xf32> to vector<4x32xf32>
    %361 = arith.addf %360, %227 : vector<4x32xf32>
    %362 = arith.mulf %357, %361 : vector<4x32xf32>
    %363 = arith.addf %359, %362 : vector<4x32xf32>
    %364 = math.tanh %363 : vector<4x32xf32>
    %cst_262 = arith.constant 1.000000e+00 : f32
    %365 = vector.broadcast %cst_262 : f32 to vector<4x32xf32>
    %366 = arith.subf %365, %358 : vector<4x32xf32>
    %367 = arith.mulf %366, %364 : vector<4x32xf32>
    %368 = arith.mulf %358, %340 : vector<4x32xf32>
    %369 = arith.addf %367, %368 : vector<4x32xf32>
    %370 = arith.index_cast %c4_i32 : i32 to index
    %c0_263 = arith.constant 0 : index
    %c0_264 = arith.constant 0 : index
    %371 = vector.load %arg4[%370, %c0_263, %c0_264] : memref<8x4x32xf32, #tpu.memory_space<vmem>>, vector<1x4x32xf32>
    %372 = vector.shape_cast %371 : vector<1x4x32xf32> to vector<4x32xf32>
    %373 = vector.shape_cast %369 : vector<4x32xf32> to vector<1x4x32xf32>
    tpu.vector_store %arg4[%370, %c0_263, %c0_264], %373 {strides = array<i32>} : memref<8x4x32xf32, #tpu.memory_space<vmem>>, vector<1x4x32xf32>,
    %c5_i32 = arith.constant 5 : i32
    %374 = arith.index_cast %c5_i32 : i32 to index
    %c0_265 = arith.constant 0 : index
    %c0_266 = arith.constant 0 : index
    %375 = vector.load %arg5[%374, %c0_265, %c0_266] : memref<8x4x128xf32, #tpu.memory_space<vmem>>, vector<1x4x128xf32>
    %376 = vector.shape_cast %375 : vector<1x4x128xf32> to vector<4x128xf32>
    %cst_267 = arith.constant dense<0.000000e+00> : vector<4x128xf32>
    %377 = tpu.matmul %369, %224, %cst_267 {dimension_numbers = #tpu.dot_dimension_numbers<[1], [0], [0], [1], [0, 0, 1, 1], [], []>} : vector<4x32xf32>, vector<32x128xf32>, vector<4x128xf32> -> vector<4x128xf32>
    %378 = arith.addf %376, %377 : vector<4x128xf32>
    %cst_268 = arith.constant 5.000000e-01 : f32
    %379 = vector.broadcast %cst_268 : f32 to vector<4x128xf32>
    %380 = arith.mulf %379, %378 : vector<4x128xf32>
    %381 = math.tanh %380 : vector<4x128xf32>
    %cst_269 = arith.constant 1.000000e+00 : f32
    %382 = vector.broadcast %cst_269 : f32 to vector<4x128xf32>
    %383 = arith.addf %381, %382 : vector<4x128xf32>
    %cst_270 = arith.constant 5.000000e-01 : f32
    %384 = vector.broadcast %cst_270 : f32 to vector<4x128xf32>
    %385 = arith.mulf %384, %383 : vector<4x128xf32>
    %386 = vector.extract_strided_slice %385 {offsets = [0, 0], sizes = [4, 32], strides = [1, 1]} : vector<4x128xf32> to vector<4x32xf32>
    %387 = vector.extract_strided_slice %385 {offsets = [0, 32], sizes = [4, 32], strides = [1, 1]} : vector<4x128xf32> to vector<4x32xf32>
    %388 = vector.extract_strided_slice %376 {offsets = [0, 64], sizes = [4, 32], strides = [1, 1]} : vector<4x128xf32> to vector<4x32xf32>
    %389 = vector.extract_strided_slice %377 {offsets = [0, 64], sizes = [4, 32], strides = [1, 1]} : vector<4x128xf32> to vector<4x32xf32>
    %390 = arith.addf %389, %227 : vector<4x32xf32>
    %391 = arith.mulf %386, %390 : vector<4x32xf32>
    %392 = arith.addf %388, %391 : vector<4x32xf32>
    %393 = math.tanh %392 : vector<4x32xf32>
    %cst_271 = arith.constant 1.000000e+00 : f32
    %394 = vector.broadcast %cst_271 : f32 to vector<4x32xf32>
    %395 = arith.subf %394, %387 : vector<4x32xf32>
    %396 = arith.mulf %395, %393 : vector<4x32xf32>
    %397 = arith.mulf %387, %369 : vector<4x32xf32>
    %398 = arith.addf %396, %397 : vector<4x32xf32>
    %399 = arith.index_cast %c5_i32 : i32 to index
    %c0_272 = arith.constant 0 : index
    %c0_273 = arith.constant 0 : index
    %400 = vector.load %arg4[%399, %c0_272, %c0_273] : memref<8x4x32xf32, #tpu.memory_space<vmem>>, vector<1x4x32xf32>
    %401 = vector.shape_cast %400 : vector<1x4x32xf32> to vector<4x32xf32>
    %402 = vector.shape_cast %398 : vector<4x32xf32> to vector<1x4x32xf32>
    tpu.vector_store %arg4[%399, %c0_272, %c0_273], %402 {strides = array<i32>} : memref<8x4x32xf32, #tpu.memory_space<vmem>>, vector<1x4x32xf32>,
    %c6_i32 = arith.constant 6 : i32
    %403 = arith.index_cast %c6_i32 : i32 to index
    %c0_274 = arith.constant 0 : index
    %c0_275 = arith.constant 0 : index
    %404 = vector.load %arg5[%403, %c0_274, %c0_275] : memref<8x4x128xf32, #tpu.memory_space<vmem>>, vector<1x4x128xf32>
    %405 = vector.shape_cast %404 : vector<1x4x128xf32> to vector<4x128xf32>
    %cst_276 = arith.constant dense<0.000000e+00> : vector<4x128xf32>
    %406 = tpu.matmul %398, %224, %cst_276 {dimension_numbers = #tpu.dot_dimension_numbers<[1], [0], [0], [1], [0, 0, 1, 1], [], []>} : vector<4x32xf32>, vector<32x128xf32>, vector<4x128xf32> -> vector<4x128xf32>
    %407 = arith.addf %405, %406 : vector<4x128xf32>
    %cst_277 = arith.constant 5.000000e-01 : f32
    %408 = vector.broadcast %cst_277 : f32 to vector<4x128xf32>
    %409 = arith.mulf %408, %407 : vector<4x128xf32>
    %410 = math.tanh %409 : vector<4x128xf32>
    %cst_278 = arith.constant 1.000000e+00 : f32
    %411 = vector.broadcast %cst_278 : f32 to vector<4x128xf32>
    %412 = arith.addf %410, %411 : vector<4x128xf32>
    %cst_279 = arith.constant 5.000000e-01 : f32
    %413 = vector.broadcast %cst_279 : f32 to vector<4x128xf32>
    %414 = arith.mulf %413, %412 : vector<4x128xf32>
    %415 = vector.extract_strided_slice %414 {offsets = [0, 0], sizes = [4, 32], strides = [1, 1]} : vector<4x128xf32> to vector<4x32xf32>
    %416 = vector.extract_strided_slice %414 {offsets = [0, 32], sizes = [4, 32], strides = [1, 1]} : vector<4x128xf32> to vector<4x32xf32>
    %417 = vector.extract_strided_slice %405 {offsets = [0, 64], sizes = [4, 32], strides = [1, 1]} : vector<4x128xf32> to vector<4x32xf32>
    %418 = vector.extract_strided_slice %406 {offsets = [0, 64], sizes = [4, 32], strides = [1, 1]} : vector<4x128xf32> to vector<4x32xf32>
    %419 = arith.addf %418, %227 : vector<4x32xf32>
    %420 = arith.mulf %415, %419 : vector<4x32xf32>
    %421 = arith.addf %417, %420 : vector<4x32xf32>
    %422 = math.tanh %421 : vector<4x32xf32>
    %cst_280 = arith.constant 1.000000e+00 : f32
    %423 = vector.broadcast %cst_280 : f32 to vector<4x32xf32>
    %424 = arith.subf %423, %416 : vector<4x32xf32>
    %425 = arith.mulf %424, %422 : vector<4x32xf32>
    %426 = arith.mulf %416, %398 : vector<4x32xf32>
    %427 = arith.addf %425, %426 : vector<4x32xf32>
    %428 = arith.index_cast %c6_i32 : i32 to index
    %c0_281 = arith.constant 0 : index
    %c0_282 = arith.constant 0 : index
    %429 = vector.load %arg4[%428, %c0_281, %c0_282] : memref<8x4x32xf32, #tpu.memory_space<vmem>>, vector<1x4x32xf32>
    %430 = vector.shape_cast %429 : vector<1x4x32xf32> to vector<4x32xf32>
    %431 = vector.shape_cast %427 : vector<4x32xf32> to vector<1x4x32xf32>
    tpu.vector_store %arg4[%428, %c0_281, %c0_282], %431 {strides = array<i32>} : memref<8x4x32xf32, #tpu.memory_space<vmem>>, vector<1x4x32xf32>,
    %c7_i32 = arith.constant 7 : i32
    %432 = arith.index_cast %c7_i32 : i32 to index
    %c0_283 = arith.constant 0 : index
    %c0_284 = arith.constant 0 : index
    %433 = vector.load %arg5[%432, %c0_283, %c0_284] : memref<8x4x128xf32, #tpu.memory_space<vmem>>, vector<1x4x128xf32>
    %434 = vector.shape_cast %433 : vector<1x4x128xf32> to vector<4x128xf32>
    %cst_285 = arith.constant dense<0.000000e+00> : vector<4x128xf32>
    %435 = tpu.matmul %427, %224, %cst_285 {dimension_numbers = #tpu.dot_dimension_numbers<[1], [0], [0], [1], [0, 0, 1, 1], [], []>} : vector<4x32xf32>, vector<32x128xf32>, vector<4x128xf32> -> vector<4x128xf32>
    %436 = arith.addf %434, %435 : vector<4x128xf32>
    %cst_286 = arith.constant 5.000000e-01 : f32
    %437 = vector.broadcast %cst_286 : f32 to vector<4x128xf32>
    %438 = arith.mulf %437, %436 : vector<4x128xf32>
    %439 = math.tanh %438 : vector<4x128xf32>
    %cst_287 = arith.constant 1.000000e+00 : f32
    %440 = vector.broadcast %cst_287 : f32 to vector<4x128xf32>
    %441 = arith.addf %439, %440 : vector<4x128xf32>
    %cst_288 = arith.constant 5.000000e-01 : f32
    %442 = vector.broadcast %cst_288 : f32 to vector<4x128xf32>
    %443 = arith.mulf %442, %441 : vector<4x128xf32>
    %444 = vector.extract_strided_slice %443 {offsets = [0, 0], sizes = [4, 32], strides = [1, 1]} : vector<4x128xf32> to vector<4x32xf32>
    %445 = vector.extract_strided_slice %443 {offsets = [0, 32], sizes = [4, 32], strides = [1, 1]} : vector<4x128xf32> to vector<4x32xf32>
    %446 = vector.extract_strided_slice %434 {offsets = [0, 64], sizes = [4, 32], strides = [1, 1]} : vector<4x128xf32> to vector<4x32xf32>
    %447 = vector.extract_strided_slice %435 {offsets = [0, 64], sizes = [4, 32], strides = [1, 1]} : vector<4x128xf32> to vector<4x32xf32>
    %448 = arith.addf %447, %227 : vector<4x32xf32>
    %449 = arith.mulf %444, %448 : vector<4x32xf32>
    %450 = arith.addf %446, %449 : vector<4x32xf32>
    %451 = math.tanh %450 : vector<4x32xf32>
    %cst_289 = arith.constant 1.000000e+00 : f32
    %452 = vector.broadcast %cst_289 : f32 to vector<4x32xf32>
    %453 = arith.subf %452, %445 : vector<4x32xf32>
    %454 = arith.mulf %453, %451 : vector<4x32xf32>
    %455 = arith.mulf %445, %427 : vector<4x32xf32>
    %456 = arith.addf %454, %455 : vector<4x32xf32>
    %457 = arith.index_cast %c7_i32 : i32 to index
    %c0_290 = arith.constant 0 : index
    %c0_291 = arith.constant 0 : index
    %458 = vector.load %arg4[%457, %c0_290, %c0_291] : memref<8x4x32xf32, #tpu.memory_space<vmem>>, vector<1x4x32xf32>
    %459 = vector.shape_cast %458 : vector<1x4x32xf32> to vector<4x32xf32>
    %460 = vector.shape_cast %456 : vector<4x32xf32> to vector<1x4x32xf32>
    tpu.vector_store %arg4[%457, %c0_290, %c0_291], %460 {strides = array<i32>} : memref<8x4x32xf32, #tpu.memory_space<vmem>>, vector<1x4x32xf32>,
    %c8_i32 = arith.constant 8 : i32
    return
  }
}

</mosaic_0001>

<bundles_post_ra>
// kernel: tpu_custom_call.1
= control target key start
LH: loop header
LB: loop body
LE: loop exit
PB: predicated region body
PF: predicated region fallthrough
CT: control target
= control target key end

     0   :  { %9 = vsyncpa [#allocation6], 0  ;;  %s982_s0 = inlined_call_operand.vmem [shape: s32[8,4], index: 0, kind: input, shape index: {}]   ;;  %s983_s1 = inlined_call_operand.hbm [shape: f32[50,1,128], index: 1, kind: input, shape index: {}]   ;;  %s984_s2 = inlined_call_operand.hbm [shape: f32[32,128], index: 2, kind: input, shape index: {}]   ;;  %s985_s3 = inlined_call_operand.vmem [shape: f32[1,32], index: 3, kind: input, shape index: {}]   ;;  %s986_s4 = inlined_call_operand.hbm [shape: f32[8,4,32], index: 4, kind: output, shape index: {}]  }
   0x1   :  { %10 = vsyncpa [#allocation4], 0 }
   0x2   :  { %11 = vsyncpa [#allocation9], 0 }
   0x3   :  { %12 = vsyncpa [#allocation5], 0  ;;  %s18_s17 = sshll.u32 %s982_s0, 4  ;;  %s26_s20 = sshll.u32 %s983_s1, 4  ;;  %s19_s17 = int_to_ptr.vmem [resolvable:$true] %s18_s17  ;;  %s27_s20 = int_to_ptr.hbm [resolvable:$true] %s26_s20 }
   0x4   :  { %s870_s21 = smov [#allocation3]   ;;  %s871_s22 = smov [#allocation7]  }
   0x5   :  { %21 = dma.vmem_to_smem %s19_s17, 128, %s870_s21, [#allocation6]  }
   0x6   :  { %s28_s23 = sshll.u32 %s871_s22, 4  ;;  %s872_s24 = smov 16   ;;  %s29_s23 = int_to_ptr.vmem [resolvable:$true] %s28_s23 }
   0x7   :  { %s873_s25 = smov 1   ;;  %s39_s28 = sshll.u32 %s984_s2, 4  ;;  %s40_s28 = int_to_ptr.hbm [resolvable:$true] %s39_s28 }
   0x8   :  { %34 = dma.hbm_to_vmem [thread:$0]  %s27_s20, 800, %s29_s23, [#allocation4], %s872_s24, %s872_s24, %s873_s25  }
   0x9   :  { %s874_s0 = smov [#allocation8]   ;;  %s875_s30 = smov 128  }
   0xa   :  { %s41_s29 = sshll.u32 %s874_s0, 4  ;;  %s876_s5 = smov 8   ;;  %s42_s29 = int_to_ptr.vmem [resolvable:$true] %s41_s29 }
   0xb   :  { %47 = dma.hbm_to_vmem [thread:$0]  %s40_s28, 512, %s42_s29, [#allocation9], %s875_s30, %s875_s30, %s876_s5  }
   0xc   :  { %862 = dma.done.wait [#allocation6], 128  }
   0xd   :  { %863 = vsyncadd [#allocation6], 4294967168 }
   0xe   :  { %864 = dma.done.wait [#allocation4], 800  }
   0xf   :  { %865 = vsyncadd [#allocation4], 4294966496 }
  0x10   :  { %866 = dma.done.wait [#allocation9], 512  }
  0x11   :  { %867 = vsyncadd [#allocation9], 4294966784 }
  0x12   :  { %62 = sfence }
  0x13   :  { %v201_v0 = vld [vmem:[#allocation8 + $0x18] sm:$0xff]  ;;  %v200_v1 = vld [vmem:[#allocation8 + $0x10] sm:$0xff]  ;;  %v745_v2 = vld [vmem:[%s985_s3] ss:$0 sm:$0xff]  ;;  %s877_s2 = smov 64   ;;  %v878_v5 = vmov 0.0  }
  0x14   :  { %222 = vmatpush.msra.mxu0 %v201_v0  ;;  %279 = vmatpush.msra.mxu1 %v201_v0  ;;  %v199_v3 = vld [vmem:[#allocation8 + $0x8] sm:$0xff]  ;;  %v198_v4 = vld [vmem:[#allocation8] sm:$0xff]  ;;  %s63_s3 = sld [smem:[#allocation3]]  ;;  %s879_s14 = smov 96   ;;  %vm262_vm0 = vcmask 257024   ;;  %vm206_vm1 = vcmask 261120  }
  0x15   :  { %333 = vmatpush.msra.mxu2 %v201_v0  ;;  %387 = vmatpush.msra.mxu3 %v201_v0  ;;  %s695_s7 = sld [smem:[#allocation3 + $0x1]] }
  0x16   :  { %223 = vmatpush.msra.mxu0 %v200_v1  ;;  %235 = vrot.lane.b32.xlu0 %v745_v2, %s877_s2  ;;  %s696_s8 = sld [smem:[#allocation3 + $0x2]] }
  0x17   :  { %280 = vmatpush.msra.mxu1 %v200_v1  ;;  %334 = vmatpush.msra.mxu2 %v200_v1  ;;  %s697_s9 = sld [smem:[#allocation3 + $0x3]] }
  0x18   :  { %224 = vmatpush.msra.mxu0 %v199_v3  ;;  %388 = vmatpush.msra.mxu3 %v200_v1  ;;  %s698_s15 = sld [smem:[#allocation3 + $0x80]] }
  0x19   :  { %281 = vmatpush.msra.mxu1 %v199_v3  ;;  %335 = vmatpush.msra.mxu2 %v199_v3  ;;  %s699_s16 = sld [smem:[#allocation3 + $0x81]] }
  0x1a   :  { %225 = vmatpush.msra.mxu0 %v198_v4  ;;  %389 = vmatpush.msra.mxu3 %v199_v3  ;;  %s64_s10 = scalar_lea.vmem [#allocation7], %s63_s3  ;;  %s700_s17 = sld [smem:[#allocation3 + $0x82]] }
  0x1b   :  { %226 = vmatmul.f32.vlgmr.msra.gmra.mxu0 %v878_v5  ;;  %282 = vmatpush.msra.mxu1 %v198_v4  ;;  %v65_v6 = vld [vmem:[%s64_s10] sm:$0x1]  ;;  %s68_s11 = scalar_lea.vmem [#allocation7], %s695_s7  ;;  %s701_s18 = sld [smem:[#allocation3 + $0x83]] }
  0x1c   :  { %336 = vmatpush.msra.mxu2 %v198_v4  ;;  %390 = vmatpush.msra.mxu3 %v198_v4  ;;  %v69_v7 = vld [vmem:[%s68_s11] sm:$0x1]  ;;  %s72_s12 = scalar_lea.vmem [#allocation7], %s696_s8  ;;  %66 = vst [vmem:[#allocation2] sm:$0x1] %v65_v6  ;;  %s702_s23 = sld [smem:[#allocation3 + $0x100]] }
  0x1d   :  { %441 = vmatpush.msrb.mxu0 %v201_v0  ;;  %495 = vmatpush.msrb.mxu1 %v201_v0  ;;  %v73_v8 = vld [vmem:[%s72_s12] sm:$0x1]  ;;  %s76_s13 = scalar_lea.vmem [#allocation7], %s697_s9  ;;  %70 = vst [vmem:[#allocation2 + $0x1] sm:$0x1] %v69_v7  ;;  %s703_s24 = sld [smem:[#allocation3 + $0x101]] }
  0x1e   :  { %549 = vmatpush.msrb.mxu2 %v201_v0  ;;  %603 = vmatpush.msrb.mxu3 %v201_v0  ;;  %v77_v9 = vld [vmem:[%s76_s13] sm:$0x1]  ;;  %74 = vst [vmem:[#allocation2 + $0x2] sm:$0x1] %v73_v8  ;;  %s80_s19 = scalar_lea.vmem [#allocation7], %s698_s15  ;;  %s704_s25 = sld [smem:[#allocation3 + $0x102]] }
  0x1f   :  { %442 = vmatpush.msrb.mxu0 %v200_v1  ;;  %496 = vmatpush.msrb.mxu1 %v200_v1  ;;  %78 = vst [vmem:[#allocation2 + $0x3] sm:$0x1] %v77_v9  ;;  %v81_v29 = vld [vmem:[%s80_s19] sm:$0x1]  ;;  %s85_s20 = scalar_lea.vmem [#allocation7], %s699_s16  ;;  %s705_s26 = sld [smem:[#allocation3 + $0x103]] }
  0x20   :  { %550 = vmatpush.msrb.mxu2 %v200_v1  ;;  %604 = vmatpush.msrb.mxu3 %v200_v1  ;;  %v86_v30 = vld [vmem:[%s85_s20] sm:$0x1]  ;;  %s89_s21 = scalar_lea.vmem [#allocation7], %s700_s17  ;;  %83 = vst [vmem:[#allocation2 + $0x4] sm:$0x1] %v81_v29  ;;  %s706_s30 = sld [smem:[#allocation3 + $0x180]] }
  0x21   :  { %443 = vmatpush.msrb.mxu0 %v199_v3  ;;  %497 = vmatpush.msrb.mxu1 %v199_v3  ;;  %v90_v31 = vld [vmem:[%s89_s21] sm:$0x1]  ;;  %s93_s22 = scalar_lea.vmem [#allocation7], %s701_s18  ;;  %87 = vst [vmem:[#allocation2 + $0x5] sm:$0x1] %v86_v30  ;;  %s707_s5 = sld [smem:[#allocation3 + $0x181]] }
  0x22   :  { %551 = vmatpush.msrb.mxu2 %v199_v3  ;;  %605 = vmatpush.msrb.mxu3 %v199_v3  ;;  %v94_v32 = vld [vmem:[%s93_s22] sm:$0x1]  ;;  %91 = vst [vmem:[#allocation2 + $0x6] sm:$0x1] %v90_v31  ;;  %s97_s27 = scalar_lea.vmem [#allocation7], %s702_s23  ;;  %s708_s1 = sld [smem:[#allocation3 + $0x182]] }
  0x23   :  { %444 = vmatpush.msrb.mxu0 %v198_v4  ;;  %498 = vmatpush.msrb.mxu1 %v198_v4  ;;  %95 = vst [vmem:[#allocation2 + $0x7] sm:$0x1] %v94_v32  ;;  %v98_v52 = vld [vmem:[%s97_s27] sm:$0x1]  ;;  %s102_s28 = scalar_lea.vmem [#allocation7], %s703_s24  ;;  %s709_s6 = sld [smem:[#allocation3 + $0x183]] }
  0x24   :  { %552 = vmatpush.msrb.mxu2 %v198_v4  ;;  %606 = vmatpush.msrb.mxu3 %v198_v4  ;;  %v103_v53 = vld [vmem:[%s102_s28] sm:$0x1]  ;;  %s106_s0 = scalar_lea.vmem [#allocation7], %s704_s25  ;;  %100 = vst [vmem:[#allocation2 + $0x8] sm:$0x1] %v98_v52  ;;  %s710_s10 = sld [smem:[#allocation3 + $0x200]] }
  0x25   :  { %v107_v54 = vld [vmem:[%s106_s0] sm:$0x1]  ;;  %s110_s29 = scalar_lea.vmem [#allocation7], %s705_s26  ;;  %104 = vst [vmem:[#allocation2 + $0x9] sm:$0x1] %v103_v53  ;;  %s711_s11 = sld [smem:[#allocation3 + $0x201]] }
  0x26   :  { %v205_v13 = vld [vmem:[#allocation2] sm:$0xf]  ;;  %108 = vst [vmem:[#allocation2 + $0xa] sm:$0x1] %v107_v54  ;;  %s114_s3 = scalar_lea.vmem [#allocation7], %s706_s30  ;;  %s712_s12 = sld [smem:[#allocation3 + $0x202]] }
  0x27   :  { %v111_v55 = vld [vmem:[%s110_s29] sm:$0x1]  ;;  %s119_s7 = scalar_lea.vmem [#allocation7], %s707_s5  ;;  %s713_s13 = sld [smem:[#allocation3 + $0x203]] }
  0x28   :  { %112 = vst [vmem:[#allocation2 + $0xb] sm:$0x1] %v111_v55  ;;  %s123_s8 = scalar_lea.vmem [#allocation7], %s708_s1  ;;  %s714_s19 = sld [smem:[#allocation3 + $0x280]] }
  0x29   :  { %s127_s9 = scalar_lea.vmem [#allocation7], %s709_s6  ;;  %s715_s20 = sld [smem:[#allocation3 + $0x281]] }
  0x2a   :  { %v264_v36 = vld [vmem:[#allocation2 + $0x4] sm:$0xf]  ;;  %s131_s15 = scalar_lea.vmem [#allocation7], %s710_s10  ;;  %s716_s21 = sld [smem:[#allocation3 + $0x282]] }
  0x2b   :  { %s136_s16 = scalar_lea.vmem [#allocation7], %s711_s11  ;;  %s717_s22 = sld [smem:[#allocation3 + $0x283]] }
  0x2c   :  { %s140_s17 = scalar_lea.vmem [#allocation7], %s712_s12  ;;  %s718_s27 = sld [smem:[#allocation3 + $0x300]] }
  0x2d   :  { %s144_s18 = scalar_lea.vmem [#allocation7], %s713_s13  ;;  %s719_s28 = sld [smem:[#allocation3 + $0x301]] }
  0x2e   :  { %s148_s23 = scalar_lea.vmem [#allocation7], %s714_s19  ;;  %s720_s0 = sld [smem:[#allocation3 + $0x302]] }
  0x2f   :  { %v318_v59 = vld [vmem:[#allocation2 + $0x8] sm:$0xf]  ;;  %s153_s24 = scalar_lea.vmem [#allocation7], %s715_s20  ;;  %s721_s29 = sld [smem:[#allocation3 + $0x303]] }
  0x30   :  { %s157_s25 = scalar_lea.vmem [#allocation7], %s716_s21  ;;  %s648_s19 = sshll.u32 %s986_s4, 4  ;;  %s649_s19 = int_to_ptr.hbm [resolvable:$true] %s648_s19 }
  0x31   :  { %s161_s26 = scalar_lea.vmem [#allocation7], %s717_s22  ;;  %s881_s20 = smov 4  }
  0x32   :  { %s165_s30 = scalar_lea.vmem [#allocation7], %s718_s27 }
  0x33   :  { %s170_s5 = scalar_lea.vmem [#allocation7], %s719_s28 }
  0x34   :  { %s174_s1 = scalar_lea.vmem [#allocation7], %s720_s0 }
  0x35   :  { %s178_s6 = scalar_lea.vmem [#allocation7], %s721_s29 }
  0x88   :  { %v920_v10 = vpop.permute.xlu0 %235 }
  0x98   :  { %v227_v11 = vpop.f32.mrf.mxu0 }
  0x99   :  { %v238_v12 = vadd.f32 %v920_v10, %v227_v11  ;;  %v230_v14 = vadd.f32 %v227_v11, %v205_v13 }
  0x9b   :  { %240 = vrot.lane.b32.xlu0 %v238_v12, %s877_s2  ;;  %v231_v15 = vmul.f32 0.5, %v230_v14  ;;  %v115_v12 = vld [vmem:[%s114_s3] sm:$0x1]  ;;  %s722_s3 = sld [smem:[#allocation3 + $0x380]] }
  0x9c   :  { %v124_v14 = vld [vmem:[%s123_s8] sm:$0x1]  ;;  %117 = vst [vmem:[#allocation2 + $0xc] sm:$0x1] %v115_v12  ;;  %s724_s8 = sld [smem:[#allocation3 + $0x382]] }
  0x9d   :  { %746 = vtanh.f32 %v231_v15  ;;  %v128_v15 = vld [vmem:[%s127_s9] sm:$0x1]  ;;  %125 = vst [vmem:[#allocation2 + $0xe] sm:$0x1] %v124_v14  ;;  %s725_s9 = sld [smem:[#allocation3 + $0x383]] }
  0x9e   :  { %129 = vst [vmem:[#allocation2 + $0xf] sm:$0x1] %v128_v15 }
  0xa1   :  { %s182_s10 = scalar_lea.vmem [#allocation7], %s722_s3 }
  0xa2   :  { %s191_s12 = scalar_lea.vmem [#allocation7], %s724_s8 }
  0xa3   :  { %v747_v16 = vpop.eup %746  ;;  %s195_s13 = scalar_lea.vmem [#allocation7], %s725_s9 }
  0xa4   :  { %v233_v17 = vadd.f32 1.0, %v747_v16 }
  0xa6   :  { %v234_v18 = vmul.f32 0.5, %v233_v17 }
  0xa8   :  { %v250_v24 = vsub.f32 1.0, %v234_v18  ;;  %v256_v27 = vmul.f32 0.0, %v234_v18 }
 0x10d   :  { %v241_v19 = vpop.permute.xlu0 %240 }
 0x10e   :  { %v243_v20 = vmul.f32 %v241_v19, %v234_v18 }
 0x110   :  { %245 = vrot.lane.b32.xlu1 %v243_v20, %s877_s2 }
 0x182   :  { %v246_v21 = vpop.permute.xlu1 %245 }
 0x183   :  { %v248_v22 = vadd.f32 %v246_v21, %v205_v13  ;;  %v120_v13 = vld [vmem:[%s119_s7] sm:$0x1]  ;;  %s723_s7 = sld [smem:[#allocation3 + $0x381]] }
 0x184   :  { %121 = vst [vmem:[#allocation2 + $0xd] sm:$0x1] %v120_v13 }
 0x185   :  { %748 = vtanh.f32 %v248_v22 }
 0x189   :  { %s187_s11 = scalar_lea.vmem [#allocation7], %s723_s7 }
 0x18b   :  { %v749_v23 = vpop.eup %748  ;;  %v372_v19 = vld [vmem:[#allocation2 + $0xc] sm:$0xf] }
 0x18c   :  { %252 = vrot.lane.b32.xlu1 %v749_v23, %s879_s14 }
 0x1fe   :  { %v253_v25 = vpop.permute.xlu1 %252 }
 0x1ff   :  { %v255_v26 = vmul.f32 %v253_v25, %v250_v24 }
 0x201   :  { %v257_v28 = vadd.f32 %v256_v27, %v255_v26 }
 0x203   :  { %259 = vrot.lane.b32.xlu2 %v257_v28, %s879_s14 }
 0x25d   :  { %v260_v33 = vpop.permute.xlu2 %259 }
 0x25e   :  { %263 = vst.msk [vmem:[#allocation10] sm:$0xf] %vm262_vm0, %v260_v33  ;;  %726 = vmatmul.msk.f32.vlgmr.msra.gmra.mxu1 %vm206_vm1, %v260_v33 }
 0x2db   :  { %v284_v34 = vpop.f32.mrf.mxu1 }
 0x2dc   :  { %v292_v35 = vadd.f32 %v284_v34, %v920_v10  ;;  %v287_v37 = vadd.f32 %v284_v34, %v264_v36 }
 0x2de   :  { %294 = vrot.lane.b32.xlu2 %v292_v35, %s877_s2  ;;  %v288_v38 = vmul.f32 0.5, %v287_v37  ;;  %v132_v35 = vld [vmem:[%s131_s15] sm:$0x1]  ;;  %s880_s15 = smov [#allocation10]  }
 0x2df   :  { %v141_v37 = vld [vmem:[%s140_s17] sm:$0x1]  ;;  %134 = vst [vmem:[#allocation2 + $0x10] sm:$0x1] %v132_v35 }
 0x2e0   :  { %750 = vtanh.f32 %v288_v38  ;;  %v145_v38 = vld [vmem:[%s144_s18] sm:$0x1]  ;;  %142 = vst [vmem:[#allocation2 + $0x12] sm:$0x1] %v141_v37 }
 0x2e1   :  { %146 = vst [vmem:[#allocation2 + $0x13] sm:$0x1] %v145_v38 }
 0x2e6   :  { %v751_v39 = vpop.eup %750 }
 0x2e7   :  { %v290_v40 = vadd.f32 1.0, %v751_v39 }
 0x2e9   :  { %v291_v41 = vmul.f32 0.5, %v290_v40 }
 0x2eb   :  { %v304_v47 = vsub.f32 1.0, %v291_v41  ;;  %v310_v49 = vmul.f32 %v291_v41, %v257_v28 }
 0x338   :  { %v295_v42 = vpop.permute.xlu2 %294 }
 0x339   :  { %v297_v43 = vmul.f32 %v295_v42, %v291_v41 }
 0x33b   :  { %299 = vrot.lane.b32.xlu0 %v297_v43, %s877_s2 }
 0x3ad   :  { %v300_v44 = vpop.permute.xlu0 %299 }
 0x3ae   :  { %v302_v45 = vadd.f32 %v300_v44, %v264_v36  ;;  %v137_v36 = vld [vmem:[%s136_s16] sm:$0x1]  ;;  %s646_s16 = sshll.u32 %s880_s15, 4  ;;  %s647_s16 = int_to_ptr.vmem [resolvable:$true] %s646_s16 }
 0x3af   :  { %138 = vst [vmem:[#allocation2 + $0x11] sm:$0x1] %v137_v36 }
 0x3b0   :  { %752 = vtanh.f32 %v302_v45 }
 0x3b6   :  { %v753_v46 = vpop.eup %752  ;;  %v426_v42 = vld [vmem:[#allocation2 + $0x10] sm:$0xf] }
 0x3b7   :  { %306 = vrot.lane.b32.xlu1 %v753_v46, %s879_s14 }
 0x429   :  { %v307_v48 = vpop.permute.xlu1 %306 }
 0x42a   :  { %v309_v50 = vmul.f32 %v307_v48, %v304_v47 }
 0x42c   :  { %v311_v51 = vadd.f32 %v310_v49, %v309_v50 }
 0x42e   :  { %313 = vrot.lane.b32.xlu2 %v311_v51, %s879_s14 }
 0x488   :  { %v314_v56 = vpop.permute.xlu2 %313 }
 0x489   :  { %317 = vst.msk [vmem:[#allocation10 + $0x4] sm:$0xf] %vm262_vm0, %v314_v56  ;;  %727 = vmatmul.msk.f32.vlgmr.msra.gmra.mxu2 %vm206_vm1, %v314_v56 }
 0x50c   :  { %v338_v57 = vpop.f32.mrf.mxu2 }
 0x50d   :  { %v346_v58 = vadd.f32 %v338_v57, %v920_v10  ;;  %v341_v60 = vadd.f32 %v338_v57, %v318_v59 }
 0x50f   :  { %348 = vrot.lane.b32.xlu0 %v346_v58, %s877_s2  ;;  %v342_v61 = vmul.f32 0.5, %v341_v60  ;;  %v149_v58 = vld [vmem:[%s148_s23] sm:$0x1] }
 0x510   :  { %v158_v60 = vld [vmem:[%s157_s25] sm:$0x1]  ;;  %151 = vst [vmem:[#allocation2 + $0x14] sm:$0x1] %v149_v58 }
 0x511   :  { %754 = vtanh.f32 %v342_v61  ;;  %v162_v61 = vld [vmem:[%s161_s26] sm:$0x1]  ;;  %159 = vst [vmem:[#allocation2 + $0x16] sm:$0x1] %v158_v60 }
 0x512   :  { %163 = vst [vmem:[#allocation2 + $0x17] sm:$0x1] %v162_v61 }
 0x517   :  { %v755_v62 = vpop.eup %754 }
 0x518   :  { %v344_v63 = vadd.f32 1.0, %v755_v62 }
 0x51a   :  { %v345_v0 = vmul.f32 0.5, %v344_v63 }
 0x51c   :  { %v358_v6 = vsub.f32 1.0, %v345_v0  ;;  %v364_v8 = vmul.f32 %v345_v0, %v311_v51 }
 0x581   :  { %v349_v1 = vpop.permute.xlu0 %348 }
 0x582   :  { %v351_v2 = vmul.f32 %v349_v1, %v345_v0 }
 0x584   :  { %353 = vrot.lane.b32.xlu1 %v351_v2, %s877_s2 }
 0x5f6   :  { %v354_v3 = vpop.permute.xlu1 %353 }
 0x5f7   :  { %v356_v4 = vadd.f32 %v354_v3, %v318_v59  ;;  %v154_v59 = vld [vmem:[%s153_s24] sm:$0x1] }
 0x5f8   :  { %155 = vst [vmem:[#allocation2 + $0x15] sm:$0x1] %v154_v59 }
 0x5f9   :  { %756 = vtanh.f32 %v356_v4 }
 0x5ff   :  { %v757_v5 = vpop.eup %756  ;;  %v480_v1 = vld [vmem:[#allocation2 + $0x14] sm:$0xf] }
 0x600   :  { %360 = vrot.lane.b32.xlu2 %v757_v5, %s879_s14 }
 0x65a   :  { %v361_v7 = vpop.permute.xlu2 %360 }
 0x65b   :  { %v363_v9 = vmul.f32 %v361_v7, %v358_v6 }
 0x65d   :  { %v365_v11 = vadd.f32 %v364_v8, %v363_v9 }
 0x65f   :  { %367 = vrot.lane.b32.xlu0 %v365_v11, %s879_s14 }
 0x6d1   :  { %v368_v16 = vpop.permute.xlu0 %367 }
 0x6d2   :  { %371 = vst.msk [vmem:[#allocation10 + $0x8] sm:$0xf] %vm262_vm0, %v368_v16  ;;  %728 = vmatmul.msk.f32.vlgmr.msra.gmra.mxu3 %vm206_vm1, %v368_v16 }
 0x755   :  { %v392_v17 = vpop.f32.mrf.mxu3 }
 0x756   :  { %v400_v18 = vadd.f32 %v392_v17, %v920_v10  ;;  %v395_v20 = vadd.f32 %v392_v17, %v372_v19 }
 0x758   :  { %402 = vrot.lane.b32.xlu1 %v400_v18, %s877_s2  ;;  %v396_v21 = vmul.f32 0.5, %v395_v20  ;;  %v166_v18 = vld [vmem:[%s165_s30] sm:$0x1] }
 0x759   :  { %v175_v20 = vld [vmem:[%s174_s1] sm:$0x1]  ;;  %168 = vst [vmem:[#allocation2 + $0x18] sm:$0x1] %v166_v18 }
 0x75a   :  { %758 = vtanh.f32 %v396_v21  ;;  %v179_v21 = vld [vmem:[%s178_s6] sm:$0x1]  ;;  %176 = vst [vmem:[#allocation2 + $0x1a] sm:$0x1] %v175_v20 }
 0x75b   :  { %180 = vst [vmem:[#allocation2 + $0x1b] sm:$0x1] %v179_v21 }
 0x760   :  { %v759_v22 = vpop.eup %758 }
 0x761   :  { %v398_v23 = vadd.f32 1.0, %v759_v22 }
 0x763   :  { %v399_v24 = vmul.f32 0.5, %v398_v23 }
 0x765   :  { %v412_v30 = vsub.f32 1.0, %v399_v24  ;;  %v418_v32 = vmul.f32 %v399_v24, %v365_v11 }
 0x7ca   :  { %v403_v25 = vpop.permute.xlu1 %402 }
 0x7cb   :  { %v405_v26 = vmul.f32 %v403_v25, %v399_v24 }
 0x7cd   :  { %407 = vrot.lane.b32.xlu2 %v405_v26, %s877_s2 }
 0x827   :  { %v408_v27 = vpop.permute.xlu2 %407 }
 0x828   :  { %v410_v28 = vadd.f32 %v408_v27, %v372_v19  ;;  %v171_v19 = vld [vmem:[%s170_s5] sm:$0x1] }
 0x829   :  { %172 = vst [vmem:[#allocation2 + $0x19] sm:$0x1] %v171_v19 }
 0x82a   :  { %760 = vtanh.f32 %v410_v28 }
 0x830   :  { %v761_v29 = vpop.eup %760  ;;  %v534_v25 = vld [vmem:[#allocation2 + $0x18] sm:$0xf] }
 0x831   :  { %414 = vrot.lane.b32.xlu0 %v761_v29, %s879_s14 }
 0x8a3   :  { %v415_v31 = vpop.permute.xlu0 %414 }
 0x8a4   :  { %v417_v33 = vmul.f32 %v415_v31, %v412_v30 }
 0x8a6   :  { %v419_v34 = vadd.f32 %v418_v32, %v417_v33 }
 0x8a8   :  { %421 = vrot.lane.b32.xlu1 %v419_v34, %s879_s14 }
 0x91a   :  { %v422_v39 = vpop.permute.xlu1 %421 }
 0x91b   :  { %425 = vst.msk [vmem:[#allocation10 + $0xc] sm:$0xf] %vm262_vm0, %v422_v39  ;;  %729 = vmatmul.msk.f32.vlgmr.msrb.gmra.mxu0 %vm206_vm1, %v422_v39 }
 0x998   :  { %v446_v40 = vpop.f32.mrf.mxu0 }
 0x999   :  { %v454_v41 = vadd.f32 %v446_v40, %v920_v10  ;;  %v449_v43 = vadd.f32 %v446_v40, %v426_v42 }
 0x99b   :  { %456 = vrot.lane.b32.xlu2 %v454_v41, %s877_s2  ;;  %v450_v44 = vmul.f32 0.5, %v449_v43  ;;  %v183_v41 = vld [vmem:[%s182_s10] sm:$0x1] }
 0x99c   :  { %v192_v43 = vld [vmem:[%s191_s12] sm:$0x1]  ;;  %185 = vst [vmem:[#allocation2 + $0x1c] sm:$0x1] %v183_v41 }
 0x99d   :  { %762 = vtanh.f32 %v450_v44  ;;  %v196_v44 = vld [vmem:[%s195_s13] sm:$0x1]  ;;  %193 = vst [vmem:[#allocation2 + $0x1e] sm:$0x1] %v192_v43 }
 0x99e   :  { %197 = vst [vmem:[#allocation2 + $0x1f] sm:$0x1] %v196_v44 }
 0x9a3   :  { %v763_v45 = vpop.eup %762 }
 0x9a4   :  { %v452_v46 = vadd.f32 1.0, %v763_v45 }
 0x9a6   :  { %v453_v47 = vmul.f32 0.5, %v452_v46 }
 0x9a8   :  { %v466_v53 = vsub.f32 1.0, %v453_v47  ;;  %v472_v55 = vmul.f32 %v453_v47, %v419_v34 }
 0x9f5   :  { %v457_v48 = vpop.permute.xlu2 %456 }
 0x9f6   :  { %v459_v49 = vmul.f32 %v457_v48, %v453_v47 }
 0x9f8   :  { %461 = vrot.lane.b32.xlu0 %v459_v49, %s877_s2 }
 0xa6a   :  { %v462_v50 = vpop.permute.xlu0 %461 }
 0xa6b   :  { %v464_v51 = vadd.f32 %v462_v50, %v426_v42  ;;  %v188_v42 = vld [vmem:[%s187_s11] sm:$0x1] }
 0xa6c   :  { %189 = vst [vmem:[#allocation2 + $0x1d] sm:$0x1] %v188_v42 }
 0xa6d   :  { %764 = vtanh.f32 %v464_v51 }
 0xa73   :  { %v765_v52 = vpop.eup %764  ;;  %v588_v48 = vld [vmem:[#allocation2 + $0x1c] sm:$0xf] }
 0xa74   :  { %468 = vrot.lane.b32.xlu1 %v765_v52, %s879_s14 }
 0xae6   :  { %v469_v54 = vpop.permute.xlu1 %468 }
 0xae7   :  { %v471_v56 = vmul.f32 %v469_v54, %v466_v53 }
 0xae9   :  { %v473_v57 = vadd.f32 %v472_v55, %v471_v56 }
 0xaeb   :  { %475 = vrot.lane.b32.xlu2 %v473_v57, %s879_s14 }
 0xb45   :  { %v476_v62 = vpop.permute.xlu2 %475 }
 0xb46   :  { %479 = vst.msk [vmem:[#allocation10 + $0x10] sm:$0xf] %vm262_vm0, %v476_v62  ;;  %730 = vmatmul.msk.f32.vlgmr.msrb.gmra.mxu1 %vm206_vm1, %v476_v62 }
 0xbc3   :  { %v500_v63 = vpop.f32.mrf.mxu1 }
 0xbc4   :  { %v508_v0 = vadd.f32 %v500_v63, %v920_v10  ;;  %v503_v2 = vadd.f32 %v500_v63, %v480_v1 }
 0xbc6   :  { %510 = vrot.lane.b32.xlu0 %v508_v0, %s877_s2  ;;  %v504_v3 = vmul.f32 0.5, %v503_v2 }
 0xbc8   :  { %766 = vtanh.f32 %v504_v3 }
 0xbce   :  { %v767_v4 = vpop.eup %766 }
 0xbcf   :  { %v506_v5 = vadd.f32 1.0, %v767_v4 }
 0xbd1   :  { %v507_v6 = vmul.f32 0.5, %v506_v5 }
 0xbd3   :  { %v520_v13 = vsub.f32 1.0, %v507_v6  ;;  %v526_v15 = vmul.f32 %v507_v6, %v473_v57 }
 0xc38   :  { %v511_v7 = vpop.permute.xlu0 %510 }
 0xc39   :  { %v513_v8 = vmul.f32 %v511_v7, %v507_v6 }
 0xc3b   :  { %515 = vrot.lane.b32.xlu1 %v513_v8, %s877_s2 }
 0xcad   :  { %v516_v9 = vpop.permute.xlu1 %515 }
 0xcae   :  { %v518_v11 = vadd.f32 %v516_v9, %v480_v1 }
 0xcb0   :  { %768 = vtanh.f32 %v518_v11 }
 0xcb6   :  { %v769_v12 = vpop.eup %768 }
 0xcb7   :  { %522 = vrot.lane.b32.xlu2 %v769_v12, %s879_s14 }
 0xd11   :  { %v523_v14 = vpop.permute.xlu2 %522 }
 0xd12   :  { %v525_v16 = vmul.f32 %v523_v14, %v520_v13 }
 0xd14   :  { %v527_v17 = vadd.f32 %v526_v15, %v525_v16 }
 0xd16   :  { %529 = vrot.lane.b32.xlu0 %v527_v17, %s879_s14 }
 0xd88   :  { %v530_v22 = vpop.permute.xlu0 %529 }
 0xd89   :  { %533 = vst.msk [vmem:[#allocation10 + $0x14] sm:$0xf] %vm262_vm0, %v530_v22  ;;  %731 = vmatmul.msk.f32.vlgmr.msrb.gmra.mxu2 %vm206_vm1, %v530_v22 }
 0xe0c   :  { %v554_v23 = vpop.f32.mrf.mxu2 }
 0xe0d   :  { %v562_v24 = vadd.f32 %v554_v23, %v920_v10  ;;  %v557_v26 = vadd.f32 %v554_v23, %v534_v25 }
 0xe0f   :  { %564 = vrot.lane.b32.xlu1 %v562_v24, %s877_s2  ;;  %v558_v27 = vmul.f32 0.5, %v557_v26 }
 0xe11   :  { %770 = vtanh.f32 %v558_v27 }
 0xe17   :  { %v771_v28 = vpop.eup %770 }
 0xe18   :  { %v560_v29 = vadd.f32 1.0, %v771_v28 }
 0xe1a   :  { %v561_v30 = vmul.f32 0.5, %v560_v29 }
 0xe1c   :  { %v574_v36 = vsub.f32 1.0, %v561_v30  ;;  %v580_v38 = vmul.f32 %v561_v30, %v527_v17 }
 0xe81   :  { %v565_v31 = vpop.permute.xlu1 %564 }
 0xe82   :  { %v567_v32 = vmul.f32 %v565_v31, %v561_v30 }
 0xe84   :  { %569 = vrot.lane.b32.xlu2 %v567_v32, %s877_s2 }
 0xede   :  { %v570_v33 = vpop.permute.xlu2 %569 }
 0xedf   :  { %v572_v34 = vadd.f32 %v570_v33, %v534_v25 }
 0xee1   :  { %772 = vtanh.f32 %v572_v34 }
 0xee7   :  { %v773_v35 = vpop.eup %772 }
 0xee8   :  { %576 = vrot.lane.b32.xlu0 %v773_v35, %s879_s14 }
 0xf5a   :  { %v577_v37 = vpop.permute.xlu0 %576 }
 0xf5b   :  { %v579_v39 = vmul.f32 %v577_v37, %v574_v36 }
 0xf5d   :  { %v581_v40 = vadd.f32 %v580_v38, %v579_v39 }
 0xf5f   :  { %583 = vrot.lane.b32.xlu1 %v581_v40, %s879_s14 }
 0xfd1   :  { %v584_v45 = vpop.permute.xlu1 %583 }
 0xfd2   :  { %587 = vst.msk [vmem:[#allocation10 + $0x18] sm:$0xf] %vm262_vm0, %v584_v45  ;;  %732 = vmatmul.msk.f32.vlgmr.msrb.gmra.mxu3 %vm206_vm1, %v584_v45 }
0x1055   :  { %v608_v46 = vpop.f32.mrf.mxu3 }
0x1056   :  { %v616_v47 = vadd.f32 %v608_v46, %v920_v10  ;;  %v611_v49 = vadd.f32 %v608_v46, %v588_v48 }
0x1058   :  { %618 = vrot.lane.b32.xlu2 %v616_v47, %s877_s2  ;;  %v612_v50 = vmul.f32 0.5, %v611_v49 }
0x105a   :  { %774 = vtanh.f32 %v612_v50 }
0x1060   :  { %v775_v51 = vpop.eup %774 }
0x1061   :  { %v614_v52 = vadd.f32 1.0, %v775_v51 }
0x1063   :  { %v615_v53 = vmul.f32 0.5, %v614_v52 }
0x1065   :  { %v628_v10 = vsub.f32 1.0, %v615_v53  ;;  %v634_v60 = vmul.f32 %v615_v53, %v581_v40 }
0x10b2   :  { %v619_v54 = vpop.permute.xlu2 %618 }
0x10b3   :  { %v621_v55 = vmul.f32 %v619_v54, %v615_v53 }
0x10b5   :  { %623 = vrot.lane.b32.xlu0 %v621_v55, %s877_s2 }
0x1127   :  { %v624_v56 = vpop.permute.xlu0 %623 }
0x1128   :  { %v626_v57 = vadd.f32 %v624_v56, %v588_v48 }
0x112a   :  { %776 = vtanh.f32 %v626_v57 }
0x1130   :  { %v777_v58 = vpop.eup %776 }
0x1131   :  { %630 = vrot.lane.b32.xlu1 %v777_v58, %s879_s14 }
0x11a3   :  { %v631_v59 = vpop.permute.xlu1 %630 }
0x11a4   :  { %v633_v61 = vmul.f32 %v631_v59, %v628_v10 }
0x11a6   :  { %v635_v62 = vadd.f32 %v634_v60, %v633_v61 }
0x11a8   :  { %637 = vrot.lane.b32.xlu2 %v635_v62, %s879_s14 }
0x1202   :  { %v638_v63 = vpop.permute.xlu2 %637 }
0x1203   :  { %641 = vst.msk [vmem:[#allocation10 + $0x1c] sm:$0xf] %vm262_vm0, %v638_v63 }
0x1204   :  { %654 = dma.vmem_to_hbm [thread:$0]  %s647_s16, 512, %s649_s19, [#allocation5], %s877_s2, %s877_s2, %s881_s20  }
0x1205   :  { %868 = dma.done.wait [#allocation5], 512  }
0x1206   :  { %869 = vsyncadd [#allocation5], 4294966784 }
0x1207   :  { %659 = vsyncpa [#allocation4], 1 }
0x1208   :  { %660 = vsyncpa [#allocation9], 1 }
0x1209   :  { %661 = vsyncpa [#allocation5], 1 }
0x120a   :  { %662 = vsyncpa [#allocation6], 1 }

</bundles_post_ra>
